<compile_context>
chip_gen: v5e
topology: v5e:2x2
jax: 0.10.0
libtpu: 0.0.40
codegen_flags: <defaults>
</compile_context>

<pallas_src>
import functools

import jax
import jax.numpy as jnp
from jax.experimental import pallas as pl
from jax.experimental.pallas import tpu as pltpu


def _dgm_kernel(tx_ref, wtx_ref, btx_ref, ws_zgr_ref, ws_h_ref, s_out_ref):
    """One batch tile of the full Net_DGM forward (up to the final projection).

    tx_ref     : (TB, dim_in)           concat([t, x], 1) tile
    wtx_ref    : (dim_in, 4*GW)         fused tx-side weights [w0|pad, gates l=0..2]
    btx_ref    : (1, 4*GW)              fused tx-side biases (same layout)
    ws_zgr_ref : (3, dim_S, GW)         per-layer fused S-side weights [Z|G|R|0]
    ws_h_ref   : (3, dim_S, dim_S)      per-layer S-side weight of gate H
    s_out_ref  : (TB, dim_S)            final hidden state S4 (projected outside)
    where GW = 4*dim_S. Gate order inside each GW-wide slab: Z, G, R, H.
    """
    dim_S = s_out_ref.shape[-1]
    GW = 4 * dim_S

    tx = tx_ref[...]

    # Single fused tx-side matmul (loop invariant) + all biases, hoisted.
    pre = (
        jnp.dot(tx, wtx_ref[...], preferred_element_type=jnp.float32)
        + btx_ref[...]
    )  # (TB, 4*GW)

    # Input layer: S1 = tanh(tx @ w0 + b0)  (first dim_S columns of slab 0).
    S = jnp.tanh(pre[:, 0:dim_S])

    # Three DGM layers, statically unrolled.
    for l in range(3):
        base = (l + 1) * GW
        pre_l = pre[:, base:base + GW]  # tx-part + bias of gates Z,G,R,H

        # Fused Z/G/R S-side matmul (H slot of ws_zgr is zero-padded).
        sa = pre_l + jnp.dot(S, ws_zgr_ref[l], preferred_element_type=jnp.float32)

        zgr = jnp.tanh(sa[:, 0:3 * dim_S])
        Z = zgr[:, 0:dim_S]
        G = zgr[:, dim_S:2 * dim_S]
        R = zgr[:, 2 * dim_S:3 * dim_S]

        # H uses concat([tx, S*R]); its S-side matmul must follow R.
        H = jnp.tanh(
            sa[:, 3 * dim_S:GW]
            + jnp.dot(S * R, ws_h_ref[l], preferred_element_type=jnp.float32)
        )

        S = (1.0 - G) * H + Z * S

    s_out_ref[...] = S


def _pack_params(p, dim_S):
    """Pack per-gate weights into fused, lane-dense slabs for the kernel."""
    GW = 4 * dim_S
    # tx-side slab: [w0 | zero-pad] then per layer [Z|G|R|H], each dim_S wide.
    wtx_slabs = [jnp.pad(p["w0"], ((0, 0), (0, GW - dim_S)))]
    btx_slabs = [jnp.pad(p["b0"], ((0, 0), (0, GW - dim_S)))]
    for l in range(3):
        wtx_slabs.append(jnp.concatenate([p["wx"][l, g] for g in range(4)], axis=1))
        btx_slabs.append(jnp.concatenate([p["bg"][l, g] for g in range(4)], axis=1))
    wtx = jnp.concatenate(wtx_slabs, axis=1)   # (dim_in, 4*GW)
    btx = jnp.concatenate(btx_slabs, axis=1)   # (1, 4*GW)

    # S-side: fuse Z,G,R along the output dim; zero-pad the H slot.
    ws_zgr = jnp.stack([
        jnp.concatenate(
            [p["ws"][l, 0], p["ws"][l, 1], p["ws"][l, 2],
             jnp.zeros((dim_S, dim_S), jnp.float32)], axis=1)
        for l in range(3)
    ])                                          # (3, dim_S, GW)
    ws_h = jnp.stack([p["ws"][l, 3] for l in range(3)])  # (3, dim_S, dim_S)
    return wtx, btx, ws_zgr, ws_h


def net_dgm_forward(t, x, params, *, tb=128):
    """Wrapper: pack weights, tile the batch, run the kernel, project to (B,1)."""
    tx = jnp.concatenate([t, x], axis=1).astype(jnp.float32)
    B, dim_in = tx.shape
    dim_S = params["w0"].shape[1]
    GW = 4 * dim_S

    wtx, btx, ws_zgr, ws_h = _pack_params(params, dim_S)

    # Pad ragged batch to a multiple of the batch tile; padded rows are dropped.
    B_pad = pl.cdiv(B, tb) * tb
    if B_pad != B:
        tx = jnp.pad(tx, ((0, B_pad - B), (0, 0)))
    grid = (B_pad // tb,)

    s_final = pl.pallas_call(
        _dgm_kernel,
        out_shape=jax.ShapeDtypeStruct((B_pad, dim_S), jnp.float32),
        grid_spec=pltpu.PrefetchScalarGridSpec(
            num_scalar_prefetch=0,
            grid=grid,
            in_specs=[
                pl.BlockSpec((tb, dim_in), lambda i: (i, 0)),          # tx tile
                pl.BlockSpec((dim_in, 4 * GW), lambda i: (0, 0)),      # resident
                pl.BlockSpec((1, 4 * GW), lambda i: (0, 0)),           # resident
                pl.BlockSpec((3, dim_S, GW), lambda i: (0, 0, 0)),     # resident
                pl.BlockSpec((3, dim_S, dim_S), lambda i: (0, 0, 0)),  # resident
            ],
            out_specs=pl.BlockSpec((tb, dim_S), lambda i: (i, 0)),
        ),
        compiler_params=pltpu.CompilerParams(
            dimension_semantics=("parallel",),
        ),
    )(tx, wtx, btx, ws_zgr, ws_h)

    # Tiny (B, dim_S) @ (dim_S, 1) output projection done outside the kernel so
    # the kernel's HBM store stays lane-dense instead of a 1-wide masked store.
    return s_final[:B] @ params["wout"] + params["bout"]


def init_params(key, dim_x, dim_S):
    """Deterministic synthetic parameters matching Net_DGM's shapes.

    PyTorch nn.Linear stores weight as (out, in); we store the transpose (in, out).
    Gate weights are stored pre-split: wx is the tx part, ws is the S part.
    """
    dim_in = dim_x + 1
    ks = jax.random.split(key, 8)
    scale = 0.1
    w0 = scale * jax.random.normal(ks[0], (dim_in, dim_S), jnp.float32)
    b0 = scale * jax.random.normal(ks[1], (1, dim_S), jnp.float32)
    wx = scale * jax.random.normal(ks[2], (3, 4, dim_in, dim_S), jnp.float32)
    ws = scale * jax.random.normal(ks[3], (3, 4, dim_S, dim_S), jnp.float32)
    bg = scale * jax.random.normal(ks[4], (3, 4, 1, dim_S), jnp.float32)
    wout = scale * jax.random.normal(ks[5], (dim_S, 1), jnp.float32)
    bout = scale * jax.random.normal(ks[6], (1, 1), jnp.float32)
    return dict(w0=w0, b0=b0, wx=wx, ws=ws, bg=bg, wout=wout, bout=bout)


def net_dgm_reference(t, x, p):
    """Pure-JAX reference (mirrors the PyTorch forward exactly)."""
    tx = jnp.concatenate([t, x], axis=1)
    S = jnp.tanh(tx @ p["w0"] + p["b0"])
    for l in range(3):
        def gate(g, s_in):
            return jnp.tanh(tx @ p["wx"][l, g] + s_in @ p["ws"][l, g] + p["bg"][l, g])
        Z = gate(0, S)
        G = gate(1, S)
        R = gate(2, S)
        H = gate(3, S * R)
        S = (1.0 - G) * H + Z * S
    return S @ p["wout"] + p["bout"]


if __name__ == "__main__":
    # Small but grid-exercising shapes: B=200 with TB=128 -> 2 grid steps,
    # including a ragged (padded) last tile. dim_S=32 -> 128-lane gate slabs.
    B, dim_x, dim_S = 200, 4, 32

    key = jax.random.PRNGKey(0)
    k_t, k_x, k_p = jax.random.split(key, 3)
    t = jax.random.normal(k_t, (B, 1), jnp.float32)
    x = jax.random.normal(k_x, (B, dim_x), jnp.float32)
    params = init_params(k_p, dim_x, dim_S)

    out = net_dgm_forward(t, x, params, tb=128)
    out = jax.block_until_ready(out)

    ref = net_dgm_reference(t, x, params)
    assert out.shape == (B, 1)
    assert jnp.allclose(out, ref, atol=3e-5, rtol=3e-5), "mismatch vs reference"

    print("KERNEL_OK")
</pallas_src>

<mosaic_0001>
module attributes {stable_mosaic.version = 11 : i64} {
  func.func @_dgm_kernel(%arg0: i32, %arg1: memref<128x5xf32, #tpu.memory_space<vmem>>, %arg2: memref<5x512xf32, #tpu.memory_space<vmem>>, %arg3: memref<1x512xf32, #tpu.memory_space<vmem>>, %arg4: memref<3x32x128xf32, #tpu.memory_space<vmem>>, %arg5: memref<3x32x32xf32, #tpu.memory_space<vmem>>, %arg6: memref<128x32xf32, #tpu.memory_space<vmem>>) attributes {dimension_semantics = [#tpu.dimension_semantics<parallel>], iteration_bounds = array<i64: 2>, scalar_prefetch = 0 : i64, scratch_operands = 0 : i64, tpu.core_type = #tpu.core_type<tc>, window_params = [{transform_indices = @transform_0, window_bounds = array<i64: 128, 5>}, {pipeline_mode = #tpu.pipeline_mode<synchronous>, transform_indices = @transform_1, window_bounds = array<i64: 5, 512>}, {pipeline_mode = #tpu.pipeline_mode<synchronous>, transform_indices = @transform_2, window_bounds = array<i64: 1, 512>}, {pipeline_mode = #tpu.pipeline_mode<synchronous>, transform_indices = @transform_3, window_bounds = array<i64: 3, 32, 128>}, {pipeline_mode = #tpu.pipeline_mode<synchronous>, transform_indices = @transform_4, window_bounds = array<i64: 3, 32, 32>}, {transform_indices = @transform_5, window_bounds = array<i64: 128, 32>}]} {
    %c0 = arith.constant 0 : index
    %c0_0 = arith.constant 0 : index
    %0 = vector.load %arg1[%c0, %c0_0] : memref<128x5xf32, #tpu.memory_space<vmem>>, vector<128x5xf32>
    %c0_1 = arith.constant 0 : index
    %c0_2 = arith.constant 0 : index
    %1 = vector.load %arg2[%c0_1, %c0_2] : memref<5x512xf32, #tpu.memory_space<vmem>>, vector<5x512xf32>
    %cst = arith.constant dense<0.000000e+00> : vector<128x512xf32>
    %2 = tpu.matmul %0, %1, %cst {dimension_numbers = #tpu.dot_dimension_numbers<[1], [0], [0], [1], [0, 0, 1, 1], [], []>} : vector<128x5xf32>, vector<5x512xf32>, vector<128x512xf32> -> vector<128x512xf32>
    %c0_3 = arith.constant 0 : index
    %c0_4 = arith.constant 0 : index
    %3 = vector.load %arg3[%c0_3, %c0_4] : memref<1x512xf32, #tpu.memory_space<vmem>>, vector<1x512xf32>
    %4 = vector.broadcast %3 : vector<1x512xf32> to vector<128x512xf32>
    %5 = arith.addf %2, %4 : vector<128x512xf32>
    %6 = vector.extract_strided_slice %5 {offsets = [0, 0], sizes = [128, 32], strides = [1, 1]} : vector<128x512xf32> to vector<128x32xf32>
    %7 = math.tanh %6 : vector<128x32xf32>
    %8 = vector.extract_strided_slice %5 {offsets = [0, 128], sizes = [128, 128], strides = [1, 1]} : vector<128x512xf32> to vector<128x128xf32>
    %c0_5 = arith.constant 0 : index
    %c0_6 = arith.constant 0 : index
    %c0_7 = arith.constant 0 : index
    %9 = vector.load %arg4[%c0_5, %c0_6, %c0_7] : memref<3x32x128xf32, #tpu.memory_space<vmem>>, vector<1x32x128xf32>
    %10 = vector.shape_cast %9 : vector<1x32x128xf32> to vector<32x128xf32>
    %cst_8 = arith.constant dense<0.000000e+00> : vector<128x128xf32>
    %11 = tpu.matmul %7, %10, %cst_8 {dimension_numbers = #tpu.dot_dimension_numbers<[1], [0], [0], [1], [0, 0, 1, 1], [], []>} : vector<128x32xf32>, vector<32x128xf32>, vector<128x128xf32> -> vector<128x128xf32>
    %12 = arith.addf %8, %11 : vector<128x128xf32>
    %13 = vector.extract_strided_slice %12 {offsets = [0, 0], sizes = [128, 96], strides = [1, 1]} : vector<128x128xf32> to vector<128x96xf32>
    %14 = math.tanh %13 : vector<128x96xf32>
    %15 = vector.extract_strided_slice %14 {offsets = [0, 0], sizes = [128, 32], strides = [1, 1]} : vector<128x96xf32> to vector<128x32xf32>
    %16 = vector.extract_strided_slice %14 {offsets = [0, 32], sizes = [128, 32], strides = [1, 1]} : vector<128x96xf32> to vector<128x32xf32>
    %17 = vector.extract_strided_slice %14 {offsets = [0, 64], sizes = [128, 32], strides = [1, 1]} : vector<128x96xf32> to vector<128x32xf32>
    %18 = vector.extract_strided_slice %12 {offsets = [0, 96], sizes = [128, 32], strides = [1, 1]} : vector<128x128xf32> to vector<128x32xf32>
    %19 = arith.mulf %7, %17 : vector<128x32xf32>
    %c0_9 = arith.constant 0 : index
    %c0_10 = arith.constant 0 : index
    %c0_11 = arith.constant 0 : index
    %20 = vector.load %arg5[%c0_9, %c0_10, %c0_11] : memref<3x32x32xf32, #tpu.memory_space<vmem>>, vector<1x32x32xf32>
    %21 = vector.shape_cast %20 : vector<1x32x32xf32> to vector<32x32xf32>
    %cst_12 = arith.constant dense<0.000000e+00> : vector<128x32xf32>
    %22 = tpu.matmul %19, %21, %cst_12 {dimension_numbers = #tpu.dot_dimension_numbers<[1], [0], [0], [1], [0, 0, 1, 1], [], []>} : vector<128x32xf32>, vector<32x32xf32>, vector<128x32xf32> -> vector<128x32xf32>
    %23 = arith.addf %18, %22 : vector<128x32xf32>
    %24 = math.tanh %23 : vector<128x32xf32>
    %cst_13 = arith.constant 1.000000e+00 : f32
    %25 = vector.broadcast %cst_13 : f32 to vector<128x32xf32>
    %26 = arith.subf %25, %16 : vector<128x32xf32>
    %27 = arith.mulf %26, %24 : vector<128x32xf32>
    %28 = arith.mulf %15, %7 : vector<128x32xf32>
    %29 = arith.addf %27, %28 : vector<128x32xf32>
    %30 = vector.extract_strided_slice %5 {offsets = [0, 256], sizes = [128, 128], strides = [1, 1]} : vector<128x512xf32> to vector<128x128xf32>
    %c1 = arith.constant 1 : index
    %c0_14 = arith.constant 0 : index
    %c0_15 = arith.constant 0 : index
    %31 = vector.load %arg4[%c1, %c0_14, %c0_15] : memref<3x32x128xf32, #tpu.memory_space<vmem>>, vector<1x32x128xf32>
    %32 = vector.shape_cast %31 : vector<1x32x128xf32> to vector<32x128xf32>
    %cst_16 = arith.constant dense<0.000000e+00> : vector<128x128xf32>
    %33 = tpu.matmul %29, %32, %cst_16 {dimension_numbers = #tpu.dot_dimension_numbers<[1], [0], [0], [1], [0, 0, 1, 1], [], []>} : vector<128x32xf32>, vector<32x128xf32>, vector<128x128xf32> -> vector<128x128xf32>
    %34 = arith.addf %30, %33 : vector<128x128xf32>
    %35 = vector.extract_strided_slice %34 {offsets = [0, 0], sizes = [128, 96], strides = [1, 1]} : vector<128x128xf32> to vector<128x96xf32>
    %36 = math.tanh %35 : vector<128x96xf32>
    %37 = vector.extract_strided_slice %36 {offsets = [0, 0], sizes = [128, 32], strides = [1, 1]} : vector<128x96xf32> to vector<128x32xf32>
    %38 = vector.extract_strided_slice %36 {offsets = [0, 32], sizes = [128, 32], strides = [1, 1]} : vector<128x96xf32> to vector<128x32xf32>
    %39 = vector.extract_strided_slice %36 {offsets = [0, 64], sizes = [128, 32], strides = [1, 1]} : vector<128x96xf32> to vector<128x32xf32>
    %40 = vector.extract_strided_slice %34 {offsets = [0, 96], sizes = [128, 32], strides = [1, 1]} : vector<128x128xf32> to vector<128x32xf32>
    %41 = arith.mulf %29, %39 : vector<128x32xf32>
    %c1_17 = arith.constant 1 : index
    %c0_18 = arith.constant 0 : index
    %c0_19 = arith.constant 0 : index
    %42 = vector.load %arg5[%c1_17, %c0_18, %c0_19] : memref<3x32x32xf32, #tpu.memory_space<vmem>>, vector<1x32x32xf32>
    %43 = vector.shape_cast %42 : vector<1x32x32xf32> to vector<32x32xf32>
    %cst_20 = arith.constant dense<0.000000e+00> : vector<128x32xf32>
    %44 = tpu.matmul %41, %43, %cst_20 {dimension_numbers = #tpu.dot_dimension_numbers<[1], [0], [0], [1], [0, 0, 1, 1], [], []>} : vector<128x32xf32>, vector<32x32xf32>, vector<128x32xf32> -> vector<128x32xf32>
    %45 = arith.addf %40, %44 : vector<128x32xf32>
    %46 = math.tanh %45 : vector<128x32xf32>
    %cst_21 = arith.constant 1.000000e+00 : f32
    %47 = vector.broadcast %cst_21 : f32 to vector<128x32xf32>
    %48 = arith.subf %47, %38 : vector<128x32xf32>
    %49 = arith.mulf %48, %46 : vector<128x32xf32>
    %50 = arith.mulf %37, %29 : vector<128x32xf32>
    %51 = arith.addf %49, %50 : vector<128x32xf32>
    %52 = vector.extract_strided_slice %5 {offsets = [0, 384], sizes = [128, 128], strides = [1, 1]} : vector<128x512xf32> to vector<128x128xf32>
    %c2 = arith.constant 2 : index
    %c0_22 = arith.constant 0 : index
    %c0_23 = arith.constant 0 : index
    %53 = vector.load %arg4[%c2, %c0_22, %c0_23] : memref<3x32x128xf32, #tpu.memory_space<vmem>>, vector<1x32x128xf32>
    %54 = vector.shape_cast %53 : vector<1x32x128xf32> to vector<32x128xf32>
    %cst_24 = arith.constant dense<0.000000e+00> : vector<128x128xf32>
    %55 = tpu.matmul %51, %54, %cst_24 {dimension_numbers = #tpu.dot_dimension_numbers<[1], [0], [0], [1], [0, 0, 1, 1], [], []>} : vector<128x32xf32>, vector<32x128xf32>, vector<128x128xf32> -> vector<128x128xf32>
    %56 = arith.addf %52, %55 : vector<128x128xf32>
    %57 = vector.extract_strided_slice %56 {offsets = [0, 0], sizes = [128, 96], strides = [1, 1]} : vector<128x128xf32> to vector<128x96xf32>
    %58 = math.tanh %57 : vector<128x96xf32>
    %59 = vector.extract_strided_slice %58 {offsets = [0, 0], sizes = [128, 32], strides = [1, 1]} : vector<128x96xf32> to vector<128x32xf32>
    %60 = vector.extract_strided_slice %58 {offsets = [0, 32], sizes = [128, 32], strides = [1, 1]} : vector<128x96xf32> to vector<128x32xf32>
    %61 = vector.extract_strided_slice %58 {offsets = [0, 64], sizes = [128, 32], strides = [1, 1]} : vector<128x96xf32> to vector<128x32xf32>
    %62 = vector.extract_strided_slice %56 {offsets = [0, 96], sizes = [128, 32], strides = [1, 1]} : vector<128x128xf32> to vector<128x32xf32>
    %63 = arith.mulf %51, %61 : vector<128x32xf32>
    %c2_25 = arith.constant 2 : index
    %c0_26 = arith.constant 0 : index
    %c0_27 = arith.constant 0 : index
    %64 = vector.load %arg5[%c2_25, %c0_26, %c0_27] : memref<3x32x32xf32, #tpu.memory_space<vmem>>, vector<1x32x32xf32>
    %65 = vector.shape_cast %64 : vector<1x32x32xf32> to vector<32x32xf32>
    %cst_28 = arith.constant dense<0.000000e+00> : vector<128x32xf32>
    %66 = tpu.matmul %63, %65, %cst_28 {dimension_numbers = #tpu.dot_dimension_numbers<[1], [0], [0], [1], [0, 0, 1, 1], [], []>} : vector<128x32xf32>, vector<32x32xf32>, vector<128x32xf32> -> vector<128x32xf32>
    %67 = arith.addf %62, %66 : vector<128x32xf32>
    %68 = math.tanh %67 : vector<128x32xf32>
    %cst_29 = arith.constant 1.000000e+00 : f32
    %69 = vector.broadcast %cst_29 : f32 to vector<128x32xf32>
    %70 = arith.subf %69, %60 : vector<128x32xf32>
    %71 = arith.mulf %70, %68 : vector<128x32xf32>
    %72 = arith.mulf %59, %51 : vector<128x32xf32>
    %73 = arith.addf %71, %72 : vector<128x32xf32>
    %c0_30 = arith.constant 0 : index
    %c0_31 = arith.constant 0 : index
    %74 = vector.load %arg6[%c0_30, %c0_31] : memref<128x32xf32, #tpu.memory_space<vmem>>, vector<128x32xf32>
    tpu.vector_store %arg6[%c0_30, %c0_31], %73 {strides = array<i32>} : memref<128x32xf32, #tpu.memory_space<vmem>>, vector<128x32xf32>,
    return
  }
  func.func @transform_0(%arg0: i32) -> (i32, i32) {
    %c0_i32 = arith.constant 0 : i32
    %c0_i32_0 = arith.constant 0 : i32
    return %arg0, %c0_i32 : i32, i32
  }
  func.func @transform_1(%arg0: i32) -> (i32, i32) {
    %c0_i32 = arith.constant 0 : i32
    %c0_i32_0 = arith.constant 0 : i32
    %c0_i32_1 = arith.constant 0 : i32
    return %c0_i32, %c0_i32_0 : i32, i32
  }
  func.func @transform_2(%arg0: i32) -> (i32, i32) {
    %c0_i32 = arith.constant 0 : i32
    %c0_i32_0 = arith.constant 0 : i32
    %c0_i32_1 = arith.constant 0 : i32
    return %c0_i32, %c0_i32_0 : i32, i32
  }
  func.func @transform_3(%arg0: i32) -> (i32, i32, i32) {
    %c0_i32 = arith.constant 0 : i32
    %c0_i32_0 = arith.constant 0 : i32
    %c0_i32_1 = arith.constant 0 : i32
    %c0_i32_2 = arith.constant 0 : i32
    return %c0_i32, %c0_i32_0, %c0_i32_1 : i32, i32, i32
  }
  func.func @transform_4(%arg0: i32) -> (i32, i32, i32) {
    %c0_i32 = arith.constant 0 : i32
    %c0_i32_0 = arith.constant 0 : i32
    %c0_i32_1 = arith.constant 0 : i32
    %c0_i32_2 = arith.constant 0 : i32
    return %c0_i32, %c0_i32_0, %c0_i32_1 : i32, i32, i32
  }
  func.func @transform_5(%arg0: i32) -> (i32, i32) {
    %c0_i32 = arith.constant 0 : i32
    %c0_i32_0 = arith.constant 0 : i32
    return %arg0, %c0_i32 : i32, i32
  }
}

</mosaic_0001>

<bundles_post_ra>
// kernel: tpu_custom_call.1
= control target key start
LH: loop header
LB: loop body
LE: loop exit
PB: predicated region body
PF: predicated region fallthrough
CT: control target
= control target key end

     0   :  { %s3285_s18 = smov 0   ;;  %s4977_s0 = inlined_call_operand.vmem [shape: f32[256,5], index: 0, kind: input, shape index: {}]   ;;  %s4978_s1 = inlined_call_operand.vmem [shape: f32[5,512], index: 1, kind: input, shape index: {}]   ;;  %s4979_s2 = inlined_call_operand.vmem [shape: f32[1,512], index: 2, kind: input, shape index: {}]   ;;  %s4980_s3 = inlined_call_operand.vmem [shape: f32[3,32,128], index: 3, kind: input, shape index: {}]   ;;  %s4981_s4 = inlined_call_operand.vmem [shape: f32[3,32,32], index: 4, kind: input, shape index: {}]   ;;  %s4982_s5 = inlined_call_operand.vmem [shape: f32[256,32], index: 5, kind: output, shape index: {}]  }
   0x1 LB: > { %s2799_s19 = sadd.s32 4294967295, %s3250_s18   ;;  %p2803_p0 = scmp.ge.s32.totalorder %s3250_s18, 1  ;;  %s3250_s18 = sphi %s3285_s18, %s15_s18  }
   0x2   : > { %p188_p1 = scmp.lt.s32.totalorder %s3250_s18, 3 }
   0x4   : > { %p189_p2 = pnand %p2803_p0, %p188_p1 }
   0x6   : > { %192 = sbr.rel (%p189_p2) target bundleno = 2866 (0xb32), region = 40 }
   0xb   : > { %v244_v0 = vld [vmem:[%s4978_s1] sm:$0x1f]  ;;  %vm307_vm0 = vcmask 1044480   ;;  %s2804_s22 = sshll.u32 %s2799_s19, 4  ;;  %vm258_vm1 = vcmask 39936   ;;  %v599_v6 = vld [vmem:[%s4980_s3 + $0x18] sm:$0xff] }
   0xc   : > { %2808 = vmatpush.msk.msra.mxu0 %vm307_vm0, %v244_v0  ;;  %p217_p3 = scmp.lt.s32.totalorder %s2804_s22, 31  ;;  %2990 = vmatpush.msk.msra.mxu2 %vm307_vm0, %v244_v0  ;;  %v598_v7 = vld [vmem:[%s4980_s3 + $0x10] sm:$0xff]  ;;  %v597_v10 = vld [vmem:[%s4980_s3 + $0x8] sm:$0xff]  ;;  %v596_v15 = vld [vmem:[%s4980_s3] sm:$0xff]  ;;  %vm600_vm2 = vcmask 261120   ;;  %s3252_s14 = smov 64  }
   0xd   : > { %v245_v21 = vld [vmem:[%s4978_s1 + $0x8] sm:$0x1f]  ;;  %v3420_v22 = vld [vmem:[%s4979_s2] sm:$0xf]  ;;  %s3253_s27 = smov 96   ;;  %s3254_s28 = smov 32  }
   0xe   : > { %s5054_s22 = smov (!%p217_p3, %s2804_s22), 31  ;;  %661 = vmatpush.msrb.mxu0 %v599_v6  ;;  %2825 = vmatpush.msk.msra.mxu1 %vm307_vm0, %v245_v21  ;;  %v3423_v23 = vperm.slane %v3420_v22, 0 }
   0xf   : > { %s2805_s23 = sshll.u32 %s5054_s22, 3  ;;  %2991 = vmatpush.msk.msra.mxu3 %vm307_vm0, %v245_v21 }
  0x10   : > { %s3306_s26 = scalar_lea.vmem %s4977_s0, %s2805_s23  ;;  %662 = vmatpush.msrb.mxu0 %v598_v7  ;;  %s4936_s30 = scalar_lea.vmem %s4982_s5, %s2805_s23 }
  0x11   : > { %v3309_v1 = vld [vmem:[%s3306_s26] sm:$0xff]  ;;  %v3314_v2 = vld [vmem:[%s3306_s26 + $0x8] sm:$0xff]  ;;  %v3319_v3 = vld [vmem:[%s3306_s26 + $0x10] sm:$0xff] }
  0x12   : > { %2809 = vmatmul.msk.f32.vlgmr.msra.gmra.mxu0 %vm258_vm1, %v3309_v1  ;;  %v3324_v4 = vld [vmem:[%s3306_s26 + $0x18] sm:$0xff]  ;;  %v3329_v5 = vld [vmem:[%s3306_s26 + $0x40] sm:$0xff]  ;;  %v3343_v9 = vld [vmem:[%s3306_s26 + $0x48] sm:$0xff]  ;;  %2826 = vmatmul.msk.f32.vlgmr.msra.gmra.mxu1 %vm258_vm1, %v3309_v1 }
  0x13   : > { %2817 = vmatmul.msk.f32.vlgmr.msra.gmra.mxu2 %vm258_vm1, %v3329_v5  ;;  %v3340_v8 = vld [vmem:[%s3306_s26 + $0x20] sm:$0xff]  ;;  %663 = vmatpush.msrb.mxu0 %v597_v10  ;;  %v3353_v11 = vld [vmem:[%s3306_s26 + $0x28] sm:$0xff]  ;;  %v3356_v12 = vld [vmem:[%s3306_s26 + $0x50] sm:$0xff] }
  0x14   : > { %v3363_v13 = vld [vmem:[%s3306_s26 + $0x30] sm:$0xff]  ;;  %v3366_v14 = vld [vmem:[%s3306_s26 + $0x58] sm:$0xff]  ;;  %v3379_v17 = vld [vmem:[%s3306_s26 + $0x60] sm:$0xff]  ;;  %2834 = vmatmul.msk.f32.vlgmr.msra.gmra.mxu3 %vm258_vm1, %v3329_v5 }
  0x15   : > { %664 = vmatpush.msrb.mxu0 %v596_v15  ;;  %v3376_v16 = vld [vmem:[%s3306_s26 + $0x38] sm:$0xff]  ;;  %v3386_v18 = vld [vmem:[%s3306_s26 + $0x68] sm:$0xff]  ;;  %v3391_v19 = vld [vmem:[%s3306_s26 + $0x70] sm:$0xff] }
  0x16   : > { %v3396_v20 = vld [vmem:[%s3306_s26 + $0x78] sm:$0xff] }
  0x1a   : > { %2810 = vmatmul.msk.f32.gmra.mxu0 %vm258_vm1, %v3314_v2  ;;  %2827 = vmatmul.msk.f32.gmra.mxu1 %vm258_vm1, %v3314_v2 }
  0x1b   : > { %2818 = vmatmul.msk.f32.gmra.mxu2 %vm258_vm1, %v3343_v9 }
  0x1c   : > { %2835 = vmatmul.msk.f32.gmra.mxu3 %vm258_vm1, %v3343_v9 }
  0x22   : > { %2811 = vmatmul.msk.f32.gmra.mxu0 %vm258_vm1, %v3319_v3  ;;  %2828 = vmatmul.msk.f32.gmra.mxu1 %vm258_vm1, %v3319_v3 }
  0x23   : > { %2819 = vmatmul.msk.f32.gmra.mxu2 %vm258_vm1, %v3356_v12 }
  0x24   : > { %2836 = vmatmul.msk.f32.gmra.mxu3 %vm258_vm1, %v3356_v12 }
  0x2a   : > { %2812 = vmatmul.msk.f32.gmra.mxu0 %vm258_vm1, %v3324_v4  ;;  %2829 = vmatmul.msk.f32.gmra.mxu1 %vm258_vm1, %v3324_v4 }
  0x2b   : > { %2820 = vmatmul.msk.f32.gmra.mxu2 %vm258_vm1, %v3366_v14 }
  0x2c   : > { %2837 = vmatmul.msk.f32.gmra.mxu3 %vm258_vm1, %v3366_v14 }
  0x32   : > { %2813 = vmatmul.msk.f32.gmra.mxu0 %vm258_vm1, %v3340_v8  ;;  %2830 = vmatmul.msk.f32.gmra.mxu1 %vm258_vm1, %v3340_v8 }
  0x33   : > { %2821 = vmatmul.msk.f32.gmra.mxu2 %vm258_vm1, %v3379_v17 }
  0x34   : > { %2838 = vmatmul.msk.f32.gmra.mxu3 %vm258_vm1, %v3379_v17 }
  0x3a   : > { %2814 = vmatmul.msk.f32.gmra.mxu0 %vm258_vm1, %v3353_v11  ;;  %2831 = vmatmul.msk.f32.gmra.mxu1 %vm258_vm1, %v3353_v11 }
  0x3b   : > { %2822 = vmatmul.msk.f32.gmra.mxu2 %vm258_vm1, %v3386_v18 }
  0x3c   : > { %2839 = vmatmul.msk.f32.gmra.mxu3 %vm258_vm1, %v3386_v18 }
  0x42   : > { %2815 = vmatmul.msk.f32.gmra.mxu0 %vm258_vm1, %v3363_v13  ;;  %2832 = vmatmul.msk.f32.gmra.mxu1 %vm258_vm1, %v3363_v13 }
  0x43   : > { %2823 = vmatmul.msk.f32.gmra.mxu2 %vm258_vm1, %v3391_v19 }
  0x44   : > { %2840 = vmatmul.msk.f32.gmra.mxu3 %vm258_vm1, %v3391_v19 }
  0x4a   : > { %2816 = vmatmul.msk.f32.gmra.mxu0 %vm258_vm1, %v3376_v16  ;;  %2833 = vmatmul.msk.f32.gmra.mxu1 %vm258_vm1, %v3376_v16 }
  0x4b   : > { %2824 = vmatmul.msk.f32.gmra.mxu2 %vm258_vm1, %v3396_v20 }
  0x4c   : > { %2841 = vmatmul.msk.f32.gmra.mxu3 %vm258_vm1, %v3396_v20 }
  0x8f   : > { %v337_v24 = vpop.f32.mrf.mxu0  ;;  %v402_v21 = vpop.f32.mrf.mxu1 }
  0x90   : > { %v338_v25 = vadd.f32 %v337_v24, %v3423_v23 }
  0x92   : > { %3003 = vtanh.f32 %v338_v25 }
  0x96   : > { %v361_v41 = vpop.f32.mrf.mxu2 }
  0x97   : > { %v340_v26 = vpop.f32.mrf.mxu0  ;;  %v362_v49 = vadd.f32 %v361_v41, %v3423_v23 }
  0x98   : > { %v3434_v27 = vpop.eup %3003  ;;  %v341_v28 = vadd.f32 %v340_v26, %v3423_v23  ;;  %v405_v26 = vpop.f32.mrf.mxu1 }
  0x99   : > { %2876 = vmatmul.msk.f32.vlgmr.msrb.gmra.mxu0 %vm600_vm2, %v3434_v27 }
  0x9a   : > { %3005 = vtanh.f32 %v341_v28 }
  0x9e   : > { %v364_v45 = vpop.f32.mrf.mxu2 }
  0x9f   : > { %v343_v29 = vpop.f32.mrf.mxu0  ;;  %v365_v52 = vadd.f32 %v364_v45, %v3423_v23 }
  0xa0   : > { %v3443_v30 = vpop.eup %3005  ;;  %v344_v31 = vadd.f32 %v343_v29, %v3423_v23  ;;  %v3524_v29 = vperm.slane %v3420_v22, 1 }
  0xa1   : > { %2877 = vmatmul.msk.f32.gmra.mxu0 %vm600_vm2, %v3443_v30 }
  0xa2   : > { %3007 = vtanh.f32 %v344_v31  ;;  %v403_v31 = vadd.f32 %v402_v21, %v3524_v29 }
  0xa6   : > { %v367_v50 = vpop.f32.mrf.mxu2 }
  0xa7   : > { %v346_v32 = vpop.f32.mrf.mxu0  ;;  %v368_v55 = vadd.f32 %v367_v50, %v3423_v23 }
  0xa8   : > { %v3452_v33 = vpop.eup %3007  ;;  %v347_v34 = vadd.f32 %v346_v32, %v3423_v23 }
  0xa9   : > { %2878 = vmatmul.msk.f32.gmra.mxu0 %vm600_vm2, %v3452_v33 }
  0xaa   : > { %3009 = vtanh.f32 %v347_v34  ;;  %v408_v34 = vpop.f32.mrf.mxu1 }
  0xab   : > { %v409_v41 = vadd.f32 %v408_v34, %v3524_v29 }
  0xae   : > { %v370_v54 = vpop.f32.mrf.mxu2 }
  0xaf   : > { %v349_v35 = vpop.f32.mrf.mxu0  ;;  %v371_v58 = vadd.f32 %v370_v54, %v3423_v23  ;;  %v829_v54 = vld [vmem:[%s4981_s4 + $0x18] sm:$0xff] }
  0xb0   : > { %v3461_v36 = vpop.eup %3009  ;;  %v350_v37 = vadd.f32 %v349_v35, %v3423_v23  ;;  %v406_v35 = vadd.f32 %v405_v26, %v3524_v29  ;;  %890 = vmatpush.msrb.mxu1 %v829_v54  ;;  %v426_v26 = vpop.f32.mrf.mxu3 }
  0xb1   : > { %2879 = vmatmul.msk.f32.gmra.mxu0 %vm600_vm2, %v3461_v36  ;;  %v427_v54 = vadd.f32 %v426_v26, %v3524_v29 }
  0xb2   : > { %3011 = vtanh.f32 %v350_v37  ;;  %v411_v22 = vpop.f32.mrf.mxu1 }
  0xb6   : > { %v373_v57 = vpop.f32.mrf.mxu2 }
  0xb7   : > { %v352_v38 = vpop.f32.mrf.mxu0  ;;  %v374_v60 = vadd.f32 %v373_v57, %v3423_v23 }
  0xb8   : > { %v3466_v39 = vpop.eup %3011  ;;  %v353_v40 = vadd.f32 %v352_v38, %v3423_v23 }
  0xb9   : > { %2880 = vmatmul.msk.f32.gmra.mxu0 %vm600_vm2, %v3466_v39 }
  0xba   : > { %3013 = vtanh.f32 %v353_v40 }
  0xbe   : > { %v376_v61 = vpop.f32.mrf.mxu2 }
  0xbf   : > { %v355_v42 = vpop.f32.mrf.mxu0  ;;  %v377_v63 = vadd.f32 %v376_v61, %v3423_v23 }
  0xc0   : > { %v3471_v43 = vpop.eup %3013  ;;  %v356_v44 = vadd.f32 %v355_v42, %v3423_v23 }
  0xc1   : > { %2881 = vmatmul.msk.f32.gmra.mxu0 %vm600_vm2, %v3471_v43 }
  0xc2   : > { %3015 = vtanh.f32 %v356_v44 }
  0xc6   : > { %v379_v6 = vpop.f32.mrf.mxu2 }
  0xc7   : > { %v358_v46 = vpop.f32.mrf.mxu0  ;;  %v380_v7 = vadd.f32 %v379_v6, %v3423_v23 }
  0xc8   : > { %v3476_v47 = vpop.eup %3015  ;;  %v359_v48 = vadd.f32 %v358_v46, %v3423_v23  ;;  %v414_v46 = vpop.f32.mrf.mxu1 }
  0xc9   : > { %2882 = vmatmul.msk.f32.gmra.mxu0 %vm600_vm2, %v3476_v47 }
  0xca   : > { %3017 = vtanh.f32 %v359_v48  ;;  %v412_v48 = vadd.f32 %v411_v22, %v3524_v29 }
  0xcb   : > { %3019 = vtanh.f32 %v362_v49 }
  0xcc   : > { %3021 = vtanh.f32 %v365_v52 }
  0xcd   : > { %3023 = vtanh.f32 %v368_v55  ;;  %v415_v55 = vadd.f32 %v414_v46, %v3524_v29 }
  0xce   : > { %3025 = vtanh.f32 %v371_v58  ;;  %v382_v15 = vpop.f32.mrf.mxu2 }
  0xcf   : > { %3027 = vtanh.f32 %v374_v60  ;;  %v383_v24 = vadd.f32 %v382_v15, %v3423_v23 }
  0xd0   : > { %v3482_v51 = vpop.eup %3017  ;;  %3029 = vtanh.f32 %v377_v63  ;;  %v417_v57 = vpop.f32.mrf.mxu1 }
  0xd1   : > { %2883 = vmatmul.msk.f32.gmra.mxu0 %vm600_vm2, %v3482_v51  ;;  %v3487_v53 = vpop.eup %3019  ;;  %3031 = vtanh.f32 %v380_v7  ;;  %v418_v63 = vadd.f32 %v417_v57, %v3524_v29 }
  0xd2   : > { %v3492_v56 = vpop.eup %3021  ;;  %3033 = vtanh.f32 %v383_v24  ;;  %v828_v24 = vld [vmem:[%s4981_s4 + $0x10] sm:$0xff] }
  0xd3   : > { %v3497_v59 = vpop.eup %3023  ;;  %891 = vmatpush.msrb.mxu1 %v828_v24 }
  0xd4   : > { %v3502_v62 = vpop.eup %3025 }
  0xd5   : > { %v3507_v0 = vpop.eup %3027 }
  0xd6   : > { %v3512_v10 = vpop.eup %3029 }
  0xd7   : > { %v3517_v25 = vpop.eup %3031 }
  0xd8   : > { %v3521_v28 = vpop.eup %3033  ;;  %v420_v7 = vpop.f32.mrf.mxu1 }
  0xd9   : > { %2884 = vmatmul.msk.f32.gmra.mxu0 %vm600_vm2, %v3487_v53 }
  0xe1   : > { %2885 = vmatmul.msk.f32.gmra.mxu0 %vm600_vm2, %v3492_v56 }
  0xe9   : > { %2886 = vmatmul.msk.f32.gmra.mxu0 %vm600_vm2, %v3497_v59 }
  0xf1   : > { %2887 = vmatmul.msk.f32.gmra.mxu0 %vm600_vm2, %v3502_v62 }
  0xf9   : > { %2888 = vmatmul.msk.f32.gmra.mxu0 %vm600_vm2, %v3507_v0 }
 0x101   : > { %2889 = vmatmul.msk.f32.gmra.mxu0 %vm600_vm2, %v3512_v10 }
 0x109   : > { %2890 = vmatmul.msk.f32.gmra.mxu0 %vm600_vm2, %v3517_v25 }
 0x111   : > { %2891 = vmatmul.msk.f32.gmra.mxu0 %vm600_vm2, %v3521_v28 }
 0x116   : > { %v666_v32 = vpop.f32.mrf.mxu0 }
 0x117   : > { %v3529_v23 = vadd.f32 %v666_v32, %v403_v31  ;;  %v421_v31 = vadd.f32 %v420_v7, %v3524_v29 }
 0x119   : > { %3035 = vtanh.f32 %v3529_v23 }
 0x11e   : > { %v669_v37 = vpop.f32.mrf.mxu0 }
 0x11f   : > { %v3533_v38 = vpop.eup %3035  ;;  %v3535_v40 = vadd.f32 %v669_v37, %v406_v35  ;;  %v423_v37 = vpop.f32.mrf.mxu1 }
 0x120   : > { %762 = vrot.lane.b32.xlu0 %v3533_v38, %s3252_s14  ;;  %v424_v22 = vadd.f32 %v423_v37, %v3524_v29 }
 0x121   : > { %3037 = vtanh.f32 %v3535_v40 }
 0x126   : > { %v672_v42 = vpop.f32.mrf.mxu0 }
 0x127   : > { %v3541_v44 = vpop.eup %3037  ;;  %v3543_v45 = vadd.f32 %v672_v42, %v409_v41  ;;  %v429_v41 = vpop.f32.mrf.mxu3 }
 0x128   : > { %764 = vrot.lane.b32.xlu0 %v3541_v44, %s3252_s14 }
 0x129   : > { %3039 = vtanh.f32 %v3543_v45 }
 0x12e   : > { %v675_v49 = vpop.f32.mrf.mxu0 }
 0x12f   : > { %v3549_v50 = vpop.eup %3039  ;;  %v3551_v52 = vadd.f32 %v675_v49, %v412_v48  ;;  %v827_v49 = vld [vmem:[%s4981_s4 + $0x8] sm:$0xff]  ;;  %v432_v57 = vpop.f32.mrf.mxu3 }
 0x130   : > { %766 = vrot.lane.b32.xlu1 %v3549_v50, %s3252_s14  ;;  %892 = vmatpush.msrb.mxu1 %v827_v49  ;;  %v433_v37 = vadd.f32 %v432_v57, %v3524_v29 }
 0x131   : > { %3041 = vtanh.f32 %v3551_v52 }
 0x136   : > { %v678_v58 = vpop.f32.mrf.mxu0 }
 0x137   : > { %v3560_v60 = vpop.eup %3041  ;;  %v3562_v61 = vadd.f32 %v678_v58, %v415_v55  ;;  %v435_v26 = vpop.f32.mrf.mxu3 }
 0x138   : > { %768 = vrot.lane.b32.xlu1 %v3560_v60, %s3252_s14 }
 0x139   : > { %3043 = vtanh.f32 %v3562_v61 }
 0x13e   : > { %v681_v6 = vpop.f32.mrf.mxu0 }
 0x13f   : > { %v3568_v15 = vpop.eup %3043  ;;  %v3570_v21 = vadd.f32 %v681_v6, %v418_v63  ;;  %v430_v6 = vadd.f32 %v429_v41, %v3524_v29  ;;  %v438_v49 = vpop.f32.mrf.mxu3 }
 0x140   : > { %770 = vrot.lane.b32.xlu2 %v3568_v15, %s3252_s14  ;;  %v439_v57 = vadd.f32 %v438_v49, %v3524_v29 }
 0x141   : > { %3045 = vtanh.f32 %v3570_v21 }
 0x146   : > { %v684_v32 = vpop.f32.mrf.mxu0 }
 0x147   : > { %v3579_v34 = vpop.eup %3045  ;;  %v3581_v35 = vadd.f32 %v684_v32, %v421_v31  ;;  %v826_v32 = vld [vmem:[%s4981_s4] sm:$0xff] }
 0x148   : > { %772 = vrot.lane.b32.xlu2 %v3579_v34, %s3252_s14  ;;  %893 = vmatpush.msrb.mxu1 %v826_v32  ;;  %v441_v32 = vpop.f32.mrf.mxu3 }
 0x149   : > { %3047 = vtanh.f32 %v3581_v35 }
 0x14e   : > { %v687_v42 = vpop.f32.mrf.mxu0 }
 0x14f   : > { %v3587_v46 = vpop.eup %3047  ;;  %v3589_v48 = vadd.f32 %v687_v42, %v424_v22 }
 0x150   : > { %774 = vrot.lane.b32.xlu0 %v3587_v46, %s3252_s14 }
 0x151   : > { %3049 = vtanh.f32 %v3589_v48 }
 0x156   : > { %v690_v55 = vpop.f32.mrf.mxu0 }
 0x157   : > { %v3598_v58 = vpop.eup %3049  ;;  %v3600_v63 = vadd.f32 %v690_v55, %v427_v54  ;;  %v436_v54 = vadd.f32 %v435_v26, %v3524_v29  ;;  %v442_v26 = vadd.f32 %v441_v32, %v3524_v29 }
 0x158   : > { %776 = vrot.lane.b32.xlu1 %v3598_v58, %s3252_s14 }
 0x159   : > { %3051 = vtanh.f32 %v3600_v63 }
 0x15e   : > { %v693_v7 = vpop.f32.mrf.mxu0 }
 0x15f   : > { %v3606_v24 = vpop.eup %3051  ;;  %v3608_v31 = vadd.f32 %v693_v7, %v430_v6 }
 0x160   : > { %778 = vrot.lane.b32.xlu2 %v3606_v24, %s3252_s14 }
 0x161   : > { %3053 = vtanh.f32 %v3608_v31 }
 0x166   : > { %v696_v22 = vpop.f32.mrf.mxu0 }
 0x167   : > { %v3617_v41 = vpop.eup %3053  ;;  %v3619_v42 = vadd.f32 %v696_v22, %v433_v37 }
 0x168   : > { %5003 = vst [vmem:[#allocation2_spill] sm:$0xff] %v3617_v41  ;;  %780 = vrot.lane.b32.xlu0 %v3617_v41, %s3252_s14 }
 0x169   : > { %3055 = vtanh.f32 %v3619_v42 }
 0x16e   : > { %v699_v55 = vpop.f32.mrf.mxu0 }
 0x16f   : > { %v3625_v6 = vpop.eup %3055  ;;  %v3627_v7 = vadd.f32 %v699_v55, %v436_v54  ;;  %v444_v55 = vpop.f32.mrf.mxu3 }
 0x170   : > { %5004 = vst [vmem:[#allocation3_spill] sm:$0xff] %v3625_v6  ;;  %782 = vrot.lane.b32.xlu1 %v3625_v6, %s3252_s14  ;;  %v445_v49 = vadd.f32 %v444_v55, %v3524_v29 }
 0x171   : > { %5005 = vst [vmem:[#allocation4_spill] sm:$0xff] %v3627_v7  ;;  %3057 = vtanh.f32 %v3627_v7 }
 0x176   : > { %v702_v37 = vpop.f32.mrf.mxu0 }
 0x177   : > { %v3633_v22 = vpop.eup %3057  ;;  %v3635_v41 = vadd.f32 %v702_v37, %v439_v57  ;;  %v447_v32 = vpop.f32.mrf.mxu3 }
 0x178   : > { %5006 = vst [vmem:[#allocation5_spill] sm:$0xff] %v3633_v22  ;;  %784 = vrot.lane.b32.xlu2 %v3633_v22, %s3252_s14 }
 0x179   : > { %5007 = vst [vmem:[#allocation6_spill] sm:$0xff] %v3635_v41  ;;  %3059 = vtanh.f32 %v3635_v41 }
 0x17e   : > { %v705_v54 = vpop.f32.mrf.mxu0 }
 0x17f   : > { %v3641_v6 = vpop.eup %3059  ;;  %v3643_v7 = vadd.f32 %v705_v54, %v442_v26  ;;  %v448_v26 = vadd.f32 %v447_v32, %v3524_v29 }
 0x180   : > { %5008 = vst [vmem:[#allocation7_spill] sm:$0xff] %v3641_v6  ;;  %786 = vrot.lane.b32.xlu0 %v3641_v6, %s3252_s14 }
 0x181   : > { %3061 = vtanh.f32 %v3643_v7 }
 0x186   : > { %v708_v57 = vpop.f32.mrf.mxu0 }
 0x187   : > { %v3649_v37 = vpop.eup %3061  ;;  %v3651_v22 = vadd.f32 %v708_v57, %v445_v49 }
 0x188   : > { %788 = vrot.lane.b32.xlu1 %v3649_v37, %s3252_s14 }
 0x189   : > { %5009 = vst [vmem:[#allocation8_spill] sm:$0xff] %v3651_v22  ;;  %3063 = vtanh.f32 %v3651_v22 }
 0x18e   : > { %v711_v54 = vpop.f32.mrf.mxu0 }
 0x18f   : > { %v3657_v41 = vpop.eup %3063  ;;  %v3659_v6 = vadd.f32 %v711_v54, %v448_v26 }
 0x190   : > { %790 = vrot.lane.b32.xlu2 %v3657_v41, %s3252_s14 }
 0x191   : > { %5010 = vst [vmem:[#allocation9_spill] sm:$0xff] %v3659_v6  ;;  %3065 = vtanh.f32 %v3659_v6 }
 0x192   : > { %v763_v55 = vpop.permute.xlu0 %762 }
 0x193   : > { %v810_v49 = vmul.f32 %v3434_v27, %v763_v55 }
 0x195   : > { %2892 = vmatmul.msk.f32.vlgmr.msrb.gmra.mxu1 %vm600_vm2, %v810_v49 }
 0x197   : > { %v3666_v57 = vpop.eup %3065 }
 0x198   : > { %5011 = vst [vmem:[#allocation10_spill] sm:$0xff] %v3666_v57  ;;  %792 = vrot.lane.b32.xlu0 %v3666_v57, %s3252_s14 }
 0x19a   : > { %v765_v29 = vpop.permute.xlu0 %764  ;;  %v771_v49 = vpop.permute.xlu2 %770 }
 0x19b   : > { %v811_v32 = vmul.f32 %v3443_v30, %v765_v29  ;;  %v814_v22 = vmul.f32 %v3466_v39, %v771_v49 }
 0x19d   : > { %2893 = vmatmul.msk.f32.gmra.mxu1 %vm600_vm2, %v811_v32 }
 0x1a2   : > { %v767_v26 = vpop.permute.xlu1 %766  ;;  %v773_v57 = vpop.permute.xlu2 %772 }
 0x1a3   : > { %v812_v54 = vmul.f32 %v3452_v33, %v767_v26  ;;  %v815_v29 = vmul.f32 %v3471_v43, %v773_v57 }
 0x1a5   : > { %2894 = vmatmul.msk.f32.gmra.mxu1 %vm600_vm2, %v812_v54 }
 0x1aa   : > { %v769_v6 = vpop.permute.xlu1 %768 }
 0x1ab   : > { %v813_v55 = vmul.f32 %v3461_v36, %v769_v6 }
 0x1ad   : > { %2895 = vmatmul.msk.f32.gmra.mxu1 %vm600_vm2, %v813_v55 }
 0x1b5   : > { %2896 = vmatmul.msk.f32.gmra.mxu1 %vm600_vm2, %v814_v22 }
 0x1ba   : > { %v779_v55 = vpop.permute.xlu2 %778 }
 0x1bb   : > { %v818_v49 = vmul.f32 %v3487_v53, %v779_v55 }
 0x1bd   : > { %2897 = vmatmul.msk.f32.gmra.mxu1 %vm600_vm2, %v815_v29 }
 0x1c2   : > { %v775_v32 = vpop.permute.xlu0 %774 }
 0x1c3   : > { %v816_v26 = vmul.f32 %v3476_v47, %v775_v32 }
 0x1c5   : > { %2898 = vmatmul.msk.f32.gmra.mxu1 %vm600_vm2, %v816_v26 }
 0x1ca   : > { %v777_v54 = vpop.permute.xlu1 %776 }
 0x1cb   : > { %v817_v6 = vmul.f32 %v3482_v51, %v777_v54 }
 0x1cd   : > { %2899 = vmatmul.msk.f32.gmra.mxu1 %vm600_vm2, %v817_v6 }
 0x1d2   : > { %v785_v26 = vpop.permute.xlu2 %784 }
 0x1d3   : > { %v821_v54 = vmul.f32 %v3502_v62, %v785_v26 }
 0x1d5   : > { %2900 = vmatmul.msk.f32.gmra.mxu1 %vm600_vm2, %v818_v49 }
 0x1da   : > { %v781_v22 = vpop.permute.xlu0 %780 }
 0x1db   : > { %v819_v57 = vmul.f32 %v3492_v56, %v781_v22 }
 0x1dd   : > { %2901 = vmatmul.msk.f32.gmra.mxu1 %vm600_vm2, %v819_v57 }
 0x1e2   : > { %v783_v29 = vpop.permute.xlu1 %782 }
 0x1e3   : > { %v820_v32 = vmul.f32 %v3497_v59, %v783_v29 }
 0x1e5   : > { %2902 = vmatmul.msk.f32.gmra.mxu1 %vm600_vm2, %v820_v32 }
 0x1ea   : > { %v791_v57 = vpop.permute.xlu2 %790 }
 0x1eb   : > { %v824_v29 = vmul.f32 %v3517_v25, %v791_v57  ;;  %v1141_v57 = vmul.f32 %v3587_v46, %v3476_v47 }
 0x1ed   : > { %2903 = vmatmul.msk.f32.gmra.mxu1 %vm600_vm2, %v821_v54 }
 0x1f2   : > { %v787_v6 = vpop.permute.xlu0 %786 }
 0x1f3   : > { %v822_v55 = vmul.f32 %v3507_v0, %v787_v6 }
 0x1f5   : > { %2904 = vmatmul.msk.f32.gmra.mxu1 %vm600_vm2, %v822_v55 }
 0x1fa   : > { %v789_v49 = vpop.permute.xlu1 %788 }
 0x1fb   : > { %v823_v22 = vmul.f32 %v3512_v10, %v789_v49  ;;  %v1135_v49 = vmul.f32 %v3533_v38, %v3434_v27  ;;  %v1136_v27 = vmul.f32 %v3541_v44, %v3443_v30  ;;  %v1139_v30 = vmul.f32 %v3568_v15, %v3466_v39 }
 0x1fd   : > { %2905 = vmatmul.msk.f32.gmra.mxu1 %vm600_vm2, %v823_v22 }
 0x205   : > { %2906 = vmatmul.msk.f32.gmra.mxu1 %vm600_vm2, %v824_v29 }
 0x20a   : > { %v793_v32 = vpop.permute.xlu0 %792 }
 0x20b   : > { %v825_v26 = vmul.f32 %v3521_v28, %v793_v32 }
 0x20d   : > { %2907 = vmatmul.msk.f32.gmra.mxu1 %vm600_vm2, %v825_v26 }
 0x212   : > { %v895_v54 = vpop.f32.mrf.mxu1 }
 0x213   : > { %959 = vrot.lane.b32.xlu1 %v895_v54, %s3253_s27  ;;  %v1137_v54 = vmul.f32 %v3549_v50, %v3452_v33  ;;  %v1140_v33 = vmul.f32 %v3579_v34, %v3471_v43  ;;  %v246_v43 = vld [vmem:[%s4978_s1 + $0x10] sm:$0x1f] }
 0x214   : > { %2842 = vmatpush.msk.msrb.mxu2 %vm307_vm0, %v246_v43 }
 0x215   : > { %2843 = vmatmul.msk.f32.vlgmr.msrb.gmra.mxu2 %vm258_vm1, %v3309_v1 }
 0x21a   : > { %v898_v6 = vpop.f32.mrf.mxu1 }
 0x21b   : > { %961 = vrot.lane.b32.xlu2 %v898_v6, %s3253_s27  ;;  %v1138_v6 = vmul.f32 %v3560_v60, %v3461_v36 }
 0x21d   : > { %2844 = vmatmul.msk.f32.gmra.mxu2 %vm258_vm1, %v3314_v2 }
 0x222   : > { %v901_v55 = vpop.f32.mrf.mxu1 }
 0x223   : > { %963 = vrot.lane.b32.xlu0 %v901_v55, %s3253_s27 }
 0x225   : > { %2845 = vmatmul.msk.f32.gmra.mxu2 %vm258_vm1, %v3319_v3 }
 0x22a   : > { %v904_v22 = vpop.f32.mrf.mxu1 }
 0x22b   : > { %965 = vrot.lane.b32.xlu1 %v904_v22, %s3253_s27  ;;  %1167 = vrot.lane.b32.xlu0 %v1135_v49, %s3254_s28 }
 0x22d   : > { %2846 = vmatmul.msk.f32.gmra.mxu2 %vm258_vm1, %v3324_v4 }
 0x232   : > { %v907_v29 = vpop.f32.mrf.mxu1 }
 0x233   : > { %1179 = vrot.lane.b32.xlu1 %v1141_v57, %s3254_s28  ;;  %967 = vrot.lane.b32.xlu2 %v907_v29, %s3253_s27 }
 0x235   : > { %2847 = vmatmul.msk.f32.gmra.mxu2 %vm258_vm1, %v3340_v8  ;;  %v1142_v8 = vmul.f32 %v3598_v58, %v3482_v51  ;;  %v1039_v51 = vsub.f32 1.0, %v3533_v38  ;;  %v1040_v38 = vsub.f32 1.0, %v3541_v44 }
 0x23a   : > { %v910_v32 = vpop.f32.mrf.mxu1 }
 0x23b   : > { %969 = vrot.lane.b32.xlu0 %v910_v32, %s3253_s27 }
 0x23d   : > { %2848 = vmatmul.msk.f32.gmra.mxu2 %vm258_vm1, %v3353_v11  ;;  %v2911_v11 = vld [vmem:[%s4980_s3 + $0x38] sm:$0xff] }
 0x23e   : > { %1328 = vmatpush.msra.mxu2 %v2911_v11  ;;  %v5013_v11 = vld [vmem:[#allocation4_spill] sm:$0xff] }
 0x242   : > { %v913_v26 = vpop.f32.mrf.mxu1 }
 0x243   : > { %971 = vrot.lane.b32.xlu1 %v913_v26, %s3253_s27  ;;  %1169 = vrot.lane.b32.xlu0 %v1136_v27, %s3254_s28 }
 0x245   : > { %2849 = vmatmul.msk.f32.gmra.mxu2 %vm258_vm1, %v3363_v13 }
 0x24a   : > { %v916_v47 = vpop.f32.mrf.mxu1 }
 0x24b   : > { %973 = vrot.lane.b32.xlu1 %v916_v47, %s3253_s27  ;;  %1171 = vrot.lane.b32.xlu0 %v1137_v54, %s3254_s28 }
 0x24d   : > { %2850 = vmatmul.msk.f32.gmra.mxu2 %vm258_vm1, %v3376_v16 }
 0x252   : > { %v919_v55 = vpop.f32.mrf.mxu1 }
 0x253   : > { %975 = vrot.lane.b32.xlu1 %v919_v55, %s3253_s27  ;;  %1173 = vrot.lane.b32.xlu0 %v1138_v6, %s3254_s28 }
 0x255   : > { %2851 = vmatmul.msk.f32.gmra.mxu2 %vm258_vm1, %v3329_v5 }
 0x25a   : > { %v922_v49 = vpop.f32.mrf.mxu1 }
 0x25b   : > { %977 = vrot.lane.b32.xlu1 %v922_v49, %s3253_s27  ;;  %1175 = vrot.lane.b32.xlu0 %v1139_v30, %s3254_s28 }
 0x25d   : > { %2852 = vmatmul.msk.f32.gmra.mxu2 %vm258_vm1, %v3343_v9 }
 0x262   : > { %v925_v22 = vpop.f32.mrf.mxu1 }
 0x263   : > { %979 = vrot.lane.b32.xlu1 %v925_v22, %s3253_s27  ;;  %1177 = vrot.lane.b32.xlu0 %v1140_v33, %s3254_s28 }
 0x265   : > { %2853 = vmatmul.msk.f32.gmra.mxu2 %vm258_vm1, %v3356_v12  ;;  %v2910_v12 = vld [vmem:[%s4980_s3 + $0x30] sm:$0xff] }
 0x266   : > { %1329 = vmatpush.msra.mxu2 %v2910_v12 }
 0x26a   : > { %v928_v36 = vpop.f32.mrf.mxu1 }
 0x26b   : > { %981 = vrot.lane.b32.xlu1 %v928_v36, %s3253_s27 }
 0x26d   : > { %2854 = vmatmul.msk.f32.gmra.mxu2 %vm258_vm1, %v3366_v14 }
 0x272   : > { %v931_v57 = vpop.f32.mrf.mxu1 }
 0x273   : > { %983 = vrot.lane.b32.xlu2 %v931_v57, %s3253_s27 }
 0x275   : > { %v962_v27 = vpop.permute.xlu2 %961  ;;  %2855 = vmatmul.msk.f32.gmra.mxu2 %vm258_vm1, %v3379_v17 }
 0x276   : > { %v1008_v26 = vadd.f32 %v962_v27, %v3535_v40 }
 0x27a   : > { %v934_v39 = vpop.f32.mrf.mxu1 }
 0x27b   : > { %985 = vrot.lane.b32.xlu0 %v934_v39, %s3253_s27 }
 0x27d   : > { %2856 = vmatmul.msk.f32.gmra.mxu2 %vm258_vm1, %v3386_v18 }
 0x285   : > { %v960_v29 = vpop.permute.xlu1 %959  ;;  %2857 = vmatmul.msk.f32.gmra.mxu2 %vm258_vm1, %v3391_v19 }
 0x286   : > { %v1007_v32 = vadd.f32 %v960_v29, %v3529_v23 }
 0x288   : > { %3067 = vtanh.f32 %v1007_v32 }
 0x289   : > { %3069 = vtanh.f32 %v1008_v26  ;;  %v1041_v26 = vsub.f32 1.0, %v3549_v50  ;;  %v1042_v50 = vsub.f32 1.0, %v3560_v60  ;;  %v1043_v60 = vsub.f32 1.0, %v3568_v15 }
 0x28a   : > { %v1044_v15 = vsub.f32 1.0, %v3579_v34  ;;  %v5015_v34 = vld [vmem:[#allocation6_spill] sm:$0xff] }
 0x28d   : > { %v968_v30 = vpop.permute.xlu2 %967  ;;  %2858 = vmatmul.msk.f32.gmra.mxu2 %vm258_vm1, %v3396_v20  ;;  %v2909_v20 = vld [vmem:[%s4980_s3 + $0x28] sm:$0xff] }
 0x28e   : > { %v3068_v54 = vpop.eup %3067  ;;  %v1011_v2 = vadd.f32 %v968_v30, %v3562_v61  ;;  %1330 = vmatpush.msra.mxu2 %v2909_v20 }
 0x28f   : > { %1071 = vrot.lane.b32.xlu2 %v3068_v54, %s3252_s14  ;;  %v3070_v47 = vpop.eup %3069  ;;  %v937_v54 = vpop.f32.mrf.mxu1 }
 0x295   : > { %v964_v23 = vpop.permute.xlu0 %963 }
 0x296   : > { %v1009_v6 = vadd.f32 %v964_v23, %v3543_v45 }
 0x297   : > { %1073 = vrot.lane.b32.xlu2 %v3070_v47, %s3252_s14  ;;  %v940_v30 = vpop.f32.mrf.mxu1 }
 0x298   : > { %3071 = vtanh.f32 %v1009_v6 }
 0x29d   : > { %v966_v1 = vpop.permute.xlu1 %965  ;;  %v1168_v45 = vpop.permute.xlu0 %1167 }
 0x29e   : > { %v3072_v55 = vpop.eup %3071  ;;  %v1010_v40 = vadd.f32 %v966_v1, %v3551_v52 }
 0x29f   : > { %1075 = vrot.lane.b32.xlu2 %v3072_v55, %s3252_s14 }
 0x2a0   : > { %3073 = vtanh.f32 %v1010_v40 }
 0x2a1   : > { %3075 = vtanh.f32 %v1011_v2  ;;  %v1143_v2 = vmul.f32 %v3606_v24, %v3487_v53 }
 0x2a5   : > { %v3758_v3 = vpop.permute.xlu1 %1179 }
 0x2a6   : > { %v3074_v49 = vpop.eup %3073 }
 0x2a7   : > { %1077 = vrot.lane.b32.xlu2 %v3074_v49, %s3252_s14  ;;  %v3076_v33 = vpop.eup %3075 }
 0x2ad   : > { %v970_v52 = vpop.permute.xlu0 %969 }
 0x2ae   : > { %v1012_v22 = vadd.f32 %v970_v52, %v3570_v21 }
 0x2af   : > { %1079 = vrot.lane.b32.xlu2 %v3076_v33, %s3252_s14 }
 0x2b0   : > { %3077 = vtanh.f32 %v1012_v22  ;;  %v5012_v22 = vld [vmem:[#allocation2_spill] sm:$0xff] }
 0x2b5   : > { %v972_v4 = vpop.permute.xlu1 %971  ;;  %v1170_v57 = vpop.permute.xlu0 %1169 }
 0x2b6   : > { %v3078_v61 = vpop.eup %3077  ;;  %v1013_v36 = vadd.f32 %v972_v4, %v3581_v35  ;;  %v1144_v4 = vmul.f32 %v5012_v22, %v3492_v56  ;;  %v5014_v56 = vld [vmem:[#allocation3_spill] sm:$0xff] }
 0x2b7   : > { %1081 = vrot.lane.b32.xlu2 %v3078_v61, %s3252_s14 }
 0x2b8   : > { %3079 = vtanh.f32 %v1013_v36 }
 0x2bd   : > { %v974_v16 = vpop.permute.xlu1 %973  ;;  %v1172_v27 = vpop.permute.xlu0 %1171 }
 0x2be   : > { %v3080_v21 = vpop.eup %3079  ;;  %v1014_v39 = vadd.f32 %v974_v16, %v3589_v48 }
 0x2bf   : > { %1083 = vrot.lane.b32.xlu0 %v3080_v21, %s3252_s14  ;;  %1181 = vrot.lane.b32.xlu2 %v1142_v8, %s3254_s28 }
 0x2c0   : > { %3081 = vtanh.f32 %v1014_v39  ;;  %v5016_v39 = vld [vmem:[#allocation5_spill] sm:$0xff] }
 0x2c1   : > { %v1146_v12 = vmul.f32 %v5016_v39, %v3502_v62  ;;  %v1148_v62 = vmul.f32 %v3649_v37, %v3512_v10  ;;  %v5018_v10 = vld [vmem:[#allocation10_spill] sm:$0xff] }
 0x2c5   : > { %v976_v14 = vpop.permute.xlu1 %975  ;;  %v1174_v6 = vpop.permute.xlu0 %1173 }
 0x2c6   : > { %v1015_v48 = vadd.f32 %v976_v14, %v3600_v63  ;;  %v3082_v43 = vpop.eup %3081 }
 0x2c8   : > { %3083 = vtanh.f32 %v1015_v48 }
 0x2cd   : > { %v3783_v13 = vpop.permute.xlu2 %983  ;;  %v978_v47 = vpop.permute.xlu1 %977 }
 0x2ce   : > { %v3084_v63 = vpop.eup %3083  ;;  %v1016_v55 = vadd.f32 %v978_v47, %v3608_v31  ;;  %v1176_v31 = vpop.permute.xlu0 %1175 }
 0x2d0   : > { %3085 = vtanh.f32 %v1016_v55 }
 0x2d6   : > { %v3086_v61 = vpop.eup %3085 }
 0x2e9   : > { %v1072_v5 = vpop.permute.xlu2 %1071 }
 0x2ea   : > { %v1119_v35 = vmul.f32 %v1072_v5, %v1039_v51  ;;  %v1145_v5 = vmul.f32 %v5014_v56, %v3497_v59  ;;  %v2908_v59 = vld [vmem:[%s4980_s3 + $0x20] sm:$0xff] }
 0x2eb   : > { %1331 = vmatpush.msra.mxu2 %v2908_v59 }
 0x2ec   : > { %v3791_v9 = vadd.f32 %v1168_v45, %v1119_v35  ;;  %v980_v45 = vpop.permute.xlu1 %979 }
 0x2ed   : > { %v1017_v53 = vadd.f32 %v980_v45, %v3619_v42  ;;  %v1178_v42 = vpop.permute.xlu0 %1177  ;;  %v5019_v45 = vld [vmem:[#allocation8_spill] sm:$0xff] }
 0x2ee   : > { %1252 = vrot.lane.b32.xlu1 %v3791_v9, %s3253_s27 }
 0x2ef   : > { %3087 = vtanh.f32 %v1017_v53 }
 0x2f1   : > { %v1074_v29 = vpop.permute.xlu2 %1073 }
 0x2f2   : > { %v1120_v17 = vmul.f32 %v1074_v29, %v1040_v38 }
 0x2f4   : > { %v3802_v32 = vadd.f32 %v1170_v57, %v1120_v17  ;;  %v982_v36 = vpop.permute.xlu1 %981  ;;  %v1019_v57 = vadd.f32 %v3783_v13, %v5015_v34  ;;  %v5017_v17 = vld [vmem:[#allocation7_spill] sm:$0xff] }
 0x2f5   : > { %v1018_v16 = vadd.f32 %v982_v36, %v5013_v11  ;;  %v3088_v35 = vpop.eup %3087  ;;  %v986_v38 = vpop.permute.xlu0 %985  ;;  %v1147_v13 = vmul.f32 %v5017_v17, %v3507_v0 }
 0x2f6   : > { %1085 = vrot.lane.b32.xlu1 %v3082_v43, %s3252_s14  ;;  %1254 = vrot.lane.b32.xlu2 %v3802_v32, %s3253_s27  ;;  %v1020_v29 = vadd.f32 %v986_v38, %v3643_v7 }
 0x2f7   : > { %3089 = vtanh.f32 %v1018_v16 }
 0x2f8   : > { %3091 = vtanh.f32 %v1019_v57 }
 0x2f9   : > { %v1076_v44 = vpop.permute.xlu2 %1075  ;;  %3093 = vtanh.f32 %v1020_v29 }
 0x2fa   : > { %v1121_v18 = vmul.f32 %v1076_v44, %v1041_v26  ;;  %v1149_v44 = vmul.f32 %v3657_v41, %v3517_v25 }
 0x2fc   : > { %v3810_v23 = vadd.f32 %v1172_v27, %v1121_v18  ;;  %v1045_v27 = vsub.f32 1.0, %v3587_v46  ;;  %v1150_v18 = vmul.f32 %v5018_v10, %v3521_v28  ;;  %v1046_v28 = vsub.f32 1.0, %v3598_v58 }
 0x2fd   : > { %v3090_v14 = vpop.eup %3089 }
 0x2fe   : > { %987 = vrot.lane.b32.xlu1 %v937_v54, %s3253_s27  ;;  %1087 = vrot.lane.b32.xlu2 %v3084_v63, %s3252_s14  ;;  %v3092_v48 = vpop.eup %3091  ;;  %v3881_v54 = vpop.f32.mrf.mxu2 }
 0x2ff   : > { %1256 = vrot.lane.b32.xlu0 %v3810_v23, %s3253_s27  ;;  %v3094_v43 = vpop.eup %3093 }
 0x301   : > { %v1078_v1 = vpop.permute.xlu2 %1077 }
 0x302   : > { %v1122_v19 = vmul.f32 %v1078_v1, %v1042_v50 }
 0x304   : > { %v3820_v40 = vadd.f32 %v1174_v6, %v1122_v19 }
 0x306   : > { %989 = vrot.lane.b32.xlu2 %v940_v30, %s3253_s27  ;;  %1258 = vrot.lane.b32.xlu1 %v3820_v40, %s3253_s27  ;;  %v3883_v46 = vpop.f32.mrf.mxu2 }
 0x307   : > { %1183 = vrot.lane.b32.xlu0 %v1143_v2, %s3254_s28 }
 0x309   : > { %v1080_v49 = vpop.permute.xlu2 %1079 }
 0x30a   : > { %v1123_v52 = vmul.f32 %v1080_v49, %v1043_v60 }
 0x30c   : > { %v3833_v33 = vadd.f32 %v1176_v31, %v1123_v52  ;;  %v1047_v31 = vsub.f32 1.0, %v3606_v24  ;;  %v5020_v52 = vld [vmem:[#allocation9_spill] sm:$0xff] }
 0x30e   : > { %1185 = vrot.lane.b32.xlu1 %v1144_v4, %s3254_s28  ;;  %1260 = vrot.lane.b32.xlu2 %v3833_v33, %s3253_s27 }
 0x30f   : > { %1089 = vrot.lane.b32.xlu0 %v3086_v61, %s3252_s14 }
 0x311   : > { %v1082_v8 = vpop.permute.xlu2 %1081 }
 0x312   : > { %v1124_v21 = vmul.f32 %v1082_v8, %v1044_v15 }
 0x314   : > { %v3843_v51 = vadd.f32 %v1178_v42, %v1124_v21  ;;  %v1048_v42 = vsub.f32 1.0, %v5012_v22  ;;  %v1049_v22 = vsub.f32 1.0, %v5014_v56 }
 0x316   : > { %1187 = vrot.lane.b32.xlu1 %v1145_v5, %s3254_s28  ;;  %1262 = vrot.lane.b32.xlu2 %v3843_v51, %s3253_s27 }
 0x317   : > { %1091 = vrot.lane.b32.xlu0 %v3088_v35, %s3252_s14 }
 0x319   : > { %v1182_v63 = vpop.permute.xlu2 %1181 }
 0x31e   : > { %1189 = vrot.lane.b32.xlu1 %v1146_v12, %s3254_s28 }
 0x31f   : > { %1093 = vrot.lane.b32.xlu0 %v3090_v14, %s3252_s14 }
 0x326   : > { %1191 = vrot.lane.b32.xlu1 %v1147_v13, %s3254_s28 }
 0x327   : > { %1095 = vrot.lane.b32.xlu0 %v3092_v48, %s3252_s14 }
 0x32e   : > { %1193 = vrot.lane.b32.xlu1 %v1148_v62, %s3254_s28  ;;  %v1050_v62 = vsub.f32 1.0, %v5016_v39 }
 0x32f   : > { %1097 = vrot.lane.b32.xlu0 %v3094_v43, %s3252_s14 }
 0x331   : > { %v1084_v7 = vpop.permute.xlu0 %1083 }
 0x332   : > { %v1125_v26 = vmul.f32 %v1084_v7, %v1045_v27 }
 0x334   : > { %v3871_v0 = vadd.f32 %v3758_v3, %v1125_v26  ;;  %v3885_v3 = vpop.f32.mrf.mxu2  ;;  %v1051_v26 = vsub.f32 1.0, %v5017_v17 }
 0x336   : > { %1195 = vrot.lane.b32.xlu1 %v1149_v44, %s3254_s28  ;;  %1264 = vrot.lane.b32.xlu2 %v3871_v0, %s3253_s27 }
 0x33c   : > { %v3893_v6 = vpop.f32.mrf.mxu2 }
 0x33e   : > { %1197 = vrot.lane.b32.xlu1 %v1150_v18, %s3254_s28 }
 0x344   : > { %v3900_v30 = vpop.f32.mrf.mxu2 }
 0x34c   : > { %v3910_v49 = vpop.f32.mrf.mxu2 }
 0x350   : > { %v3887_v47 = vpop.permute.xlu2 %1254 }
 0x354   : > { %v3925_v11 = vpop.f32.mrf.mxu2 }
 0x358   : > { %v1088_v19 = vpop.permute.xlu2 %1087 }
 0x359   : > { %v1127_v4 = vmul.f32 %v1088_v19, %v1047_v31 }
 0x35c   : > { %v3939_v38 = vpop.f32.mrf.mxu2 }
 0x360   : > { %v3889_v25 = vpop.permute.xlu1 %1252  ;;  %v990_v58 = vpop.permute.xlu2 %989 }
 0x361   : > { %2912 = vmatmul.msk.f32.vlgmr.msra.gmra.mxu2 %vm600_vm2, %v3889_v25  ;;  %v1022_v53 = vadd.f32 %v990_v58, %v5020_v52 }
 0x364   : > { %v3952_v7 = vpop.f32.mrf.mxu2 }
 0x368   : > { %v1086_v50 = vpop.permute.xlu1 %1085  ;;  %v3922_v24 = vpop.permute.xlu2 %1260 }
 0x369   : > { %v1126_v1 = vmul.f32 %v1086_v50, %v1046_v28  ;;  %2913 = vmatmul.msk.f32.gmra.mxu2 %vm600_vm2, %v3887_v47  ;;  %v1052_v50 = vsub.f32 1.0, %v3649_v37 }
 0x36b   : > { %v3898_v55 = vadd.f32 %v1182_v63, %v1126_v1 }
 0x36c   : > { %v3961_v39 = vpop.f32.mrf.mxu2 }
 0x36d   : > { %1266 = vrot.lane.b32.xlu2 %v3898_v55, %s3253_s27 }
 0x370   : > { %v988_v2 = vpop.permute.xlu1 %987  ;;  %v3934_v57 = vpop.permute.xlu2 %1262 }
 0x371   : > { %v1021_v20 = vadd.f32 %v988_v2, %v5019_v45  ;;  %v3905_v60 = vpop.permute.xlu0 %1256 }
 0x372   : > { %2914 = vmatmul.msk.f32.gmra.mxu2 %vm600_vm2, %v3905_v60 }
 0x373   : > { %3095 = vtanh.f32 %v1021_v20 }
 0x374   : > { %3097 = vtanh.f32 %v1022_v53  ;;  %v3968_v17 = vpop.f32.mrf.mxu2 }
 0x378   : > { %v3913_v61 = vpop.permute.xlu1 %1258 }
 0x379   : > { %v3096_v15 = vpop.eup %3095  ;;  %v1184_v36 = vpop.permute.xlu0 %1183 }
 0x37a   : > { %v3915_v8 = vadd.f32 %v1184_v36, %v1127_v4  ;;  %2915 = vmatmul.msk.f32.gmra.mxu2 %vm600_vm2, %v3913_v61  ;;  %1099 = vrot.lane.b32.xlu0 %v3096_v15, %s3252_s14  ;;  %v3098_v16 = vpop.eup %3097  ;;  %v3991_v15 = vld [vmem:[%s4979_s2] sm:$0xf] }
 0x37b   : > { %5021 = vst [vmem:[#allocation2_spill] sm:$0xff] %v3991_v15  ;;  %v3994_v36 = vperm.slane %v3991_v15, 2 }
 0x37c   : > { %1268 = vrot.lane.b32.xlu2 %v3915_v8, %s3253_s27  ;;  %v3970_v20 = vpop.f32.mrf.mxu2 }
 0x380   : > { %v1186_v21 = vpop.permute.xlu1 %1185 }
 0x381   : > { %v1090_v5 = vpop.permute.xlu0 %1089 }
 0x382   : > { %v1128_v35 = vmul.f32 %v1090_v5, %v1048_v42  ;;  %2916 = vmatmul.msk.f32.gmra.mxu2 %vm600_vm2, %v3922_v24  ;;  %1101 = vrot.lane.b32.xlu0 %v3098_v16, %s3252_s14  ;;  %v468_v42 = vadd.f32 %v3881_v54, %v3994_v36 }
 0x384   : > { %v3930_v34 = vadd.f32 %v1186_v21, %v1128_v35  ;;  %v3972_v58 = vpop.f32.mrf.mxu2 }
 0x386   : > { %1270 = vrot.lane.b32.xlu2 %v3930_v34, %s3253_s27 }
 0x388   : > { %v1188_v12 = vpop.permute.xlu1 %1187 }
 0x389   : > { %v1092_v14 = vpop.permute.xlu0 %1091 }
 0x38a   : > { %v1129_v59 = vmul.f32 %v1092_v14, %v1049_v22  ;;  %2917 = vmatmul.msk.f32.gmra.mxu2 %vm600_vm2, %v3934_v57  ;;  %v1053_v22 = vsub.f32 1.0, %v3657_v41  ;;  %v471_v14 = vadd.f32 %v3883_v46, %v3994_v36  ;;  %v1054_v41 = vsub.f32 1.0, %v5018_v10 }
 0x38b   : > { %v474_v46 = vadd.f32 %v3885_v3, %v3994_v36  ;;  %v477_v10 = vadd.f32 %v3893_v6, %v3994_v36  ;;  %v480_v6 = vadd.f32 %v3900_v30, %v3994_v36  ;;  %v483_v30 = vadd.f32 %v3910_v49, %v3994_v36 }
 0x38c   : > { %v3941_v29 = vadd.f32 %v1188_v12, %v1129_v59  ;;  %v3974_v31 = vpop.f32.mrf.mxu2  ;;  %v486_v49 = vadd.f32 %v3925_v11, %v3994_v36 }
 0x38e   : > { %1272 = vrot.lane.b32.xlu2 %v3941_v29, %s3253_s27 }
 0x390   : > { %v1190_v13 = vpop.permute.xlu1 %1189  ;;  %v3945_v48 = vpop.permute.xlu2 %1264 }
 0x391   : > { %v1094_v43 = vpop.permute.xlu0 %1093 }
 0x392   : > { %v1130_v27 = vmul.f32 %v1094_v43, %v1050_v62  ;;  %2918 = vmatmul.msk.f32.gmra.mxu2 %vm600_vm2, %v3945_v48 }
 0x394   : > { %v3950_v56 = vadd.f32 %v1190_v13, %v1130_v27  ;;  %v3980_v37 = vpop.f32.mrf.mxu2 }
 0x396   : > { %1274 = vrot.lane.b32.xlu0 %v3950_v56, %s3253_s27 }
 0x398   : > { %v1192_v44 = vpop.permute.xlu1 %1191 }
 0x399   : > { %v1096_v18 = vpop.permute.xlu0 %1095 }
 0x39a   : > { %v1131_v63 = vmul.f32 %v1096_v18, %v1051_v26 }
 0x39c   : > { %v3957_v28 = vadd.f32 %v1192_v44, %v1131_v63  ;;  %v3986_v4 = vpop.f32.mrf.mxu2 }
 0x39e   : > { %1276 = vrot.lane.b32.xlu1 %v3957_v28, %s3253_s27 }
 0x3a0   : > { %v1194_v2 = vpop.permute.xlu1 %1193 }
 0x3a1   : > { %v1098_v1 = vpop.permute.xlu0 %1097 }
 0x3a2   : > { %v1132_v19 = vmul.f32 %v1098_v1, %v1052_v50 }
 0x3a4   : > { %v3964_v45 = vadd.f32 %v1194_v2, %v1132_v19 }
 0x3a6   : > { %1278 = vrot.lane.b32.xlu2 %v3964_v45, %s3253_s27 }
 0x3a8   : > { %v1196_v12 = vpop.permute.xlu1 %1195 }
 0x3b0   : > { %v1198_v63 = vpop.permute.xlu1 %1197 }
 0x3c7   : > { %v3976_v52 = vpop.permute.xlu2 %1266 }
 0x3c8   : > { %2919 = vmatmul.msk.f32.gmra.mxu2 %vm600_vm2, %v3976_v52 }
 0x3d6   : > { %v3982_v53 = vpop.permute.xlu2 %1268 }
 0x3d7   : > { %2920 = vmatmul.msk.f32.gmra.mxu2 %vm600_vm2, %v3982_v53 }
 0x3e0   : > { %v3996_v21 = vpop.permute.xlu2 %1270 }
 0x3e1   : > { %2921 = vmatmul.msk.f32.gmra.mxu2 %vm600_vm2, %v3996_v21 }
 0x3e4   : > { %v1333_v16 = vpop.f32.mrf.mxu2 }
 0x3e5   : > { %v4002_v5 = vadd.f32 %v1333_v16, %v468_v42  ;;  %v247_v42 = vld [vmem:[%s4978_s1 + $0x18] sm:$0x1f] }
 0x3e6   : > { %2859 = vmatpush.msk.msrb.mxu3 %vm307_vm0, %v247_v42 }
 0x3e7   : > { %3099 = vtanh.f32 %v4002_v5 }
 0x3e8   : > { %v4005_v35 = vpop.permute.xlu2 %1272 }
 0x3e9   : > { %2922 = vmatmul.msk.f32.gmra.mxu2 %vm600_vm2, %v4005_v35 }
 0x3ec   : > { %v1336_v59 = vpop.f32.mrf.mxu2  ;;  %v1100_v13 = vpop.permute.xlu0 %1099 }
 0x3ed   : > { %v4012_v62 = vpop.eup %3099  ;;  %v1133_v54 = vmul.f32 %v1100_v13, %v1053_v22  ;;  %v4014_v43 = vadd.f32 %v1336_v59, %v471_v14 }
 0x3ee   : > { %1429 = vrot.lane.b32.xlu2 %v4012_v62, %s3253_s27 }
 0x3ef   : > { %v4018_v27 = vadd.f32 %v1196_v12, %v1133_v54  ;;  %3101 = vtanh.f32 %v4014_v43  ;;  %v3228_v12 = vld [vmem:[%s3306_s26] sm:$0xff]  ;;  %v3229_v54 = vld [vmem:[%s3306_s26 + $0x8] sm:$0xff] }
 0x3f0   : > { %2860 = vmatmul.msk.f32.vlgmr.msrb.gmra.mxu3 %vm258_vm1, %v3228_v12  ;;  %v3231_v12 = vld [vmem:[%s3306_s26 + $0x18] sm:$0xff] }
 0x3f1   : > { %1280 = vrot.lane.b32.xlu0 %v4018_v27, %s3253_s27 }
 0x3f4   : > { %v1102_v26 = vpop.permute.xlu0 %1101 }
 0x3f5   : > { %v1339_v44 = vpop.f32.mrf.mxu2  ;;  %v1134_v18 = vmul.f32 %v1102_v26, %v1054_v41  ;;  %v4030_v19 = vpop.eup %3101 }
 0x3f6   : > { %v4026_v50 = vadd.f32 %v1339_v44, %v474_v46 }
 0x3f7   : > { %v4028_v1 = vadd.f32 %v1198_v63, %v1134_v18  ;;  %v3230_v18 = vld [vmem:[%s3306_s26 + $0x10] sm:$0xff] }
 0x3f8   : > { %3103 = vtanh.f32 %v4026_v50  ;;  %2861 = vmatmul.msk.f32.gmra.mxu3 %vm258_vm1, %v3229_v54  ;;  %v3234_v54 = vld [vmem:[%s3306_s26 + $0x30] sm:$0xff] }
 0x3f9   : > { %1431 = vrot.lane.b32.xlu0 %v4030_v19, %s3253_s27  ;;  %1282 = vrot.lane.b32.xlu1 %v4028_v1, %s3253_s27 }
 0x3fd   : > { %v1342_v3 = vpop.f32.mrf.mxu2 }
 0x3fe   : > { %v4039_v2 = vadd.f32 %v1342_v3, %v477_v10  ;;  %v4044_v16 = vpop.eup %3103 }
 0x400   : > { %3105 = vtanh.f32 %v4039_v2  ;;  %2862 = vmatmul.msk.f32.gmra.mxu3 %vm258_vm1, %v3230_v18  ;;  %v4090_v42 = vpop.permute.xlu2 %1278 }
 0x401   : > { %1433 = vrot.lane.b32.xlu1 %v4044_v16, %s3253_s27 }
 0x405   : > { %v1345_v22 = vpop.f32.mrf.mxu2 }
 0x406   : > { %v4054_v14 = vpop.eup %3105  ;;  %v4056_v59 = vadd.f32 %v1345_v22, %v480_v6  ;;  %v3232_v6 = vld [vmem:[%s3306_s26 + $0x20] sm:$0xff]  ;;  %v3233_v22 = vld [vmem:[%s3306_s26 + $0x28] sm:$0xff] }
 0x407   : > { %1435 = vrot.lane.b32.xlu2 %v4054_v14, %s3253_s27 }
 0x408   : > { %3107 = vtanh.f32 %v4056_v59  ;;  %v4061_v13 = vpop.permute.xlu0 %1274  ;;  %2863 = vmatmul.msk.f32.gmra.mxu3 %vm258_vm1, %v3231_v12  ;;  %v489_v12 = vadd.f32 %v3939_v38, %v3994_v36 }
 0x409   : > { %2923 = vmatmul.msk.f32.gmra.mxu2 %vm600_vm2, %v4061_v13 }
 0x40d   : > { %v1348_v41 = vpop.f32.mrf.mxu2 }
 0x40e   : > { %v4069_v46 = vpop.eup %3107  ;;  %v4071_v26 = vadd.f32 %v1348_v41, %v483_v30  ;;  %v3235_v30 = vld [vmem:[%s3306_s26 + $0x38] sm:$0xff]  ;;  %v3236_v41 = vld [vmem:[%s3306_s26 + $0x40] sm:$0xff] }
 0x40f   : > { %1437 = vrot.lane.b32.xlu0 %v4069_v46, %s3253_s27 }
 0x410   : > { %3109 = vtanh.f32 %v4071_v26  ;;  %v4076_v44 = vpop.permute.xlu1 %1276  ;;  %2864 = vmatmul.msk.f32.gmra.mxu3 %vm258_vm1, %v3232_v6 }
 0x411   : > { %2924 = vmatmul.msk.f32.gmra.mxu2 %vm600_vm2, %v4076_v44 }
 0x415   : > { %v1351_v63 = vpop.f32.mrf.mxu2 }
 0x416   : > { %v4084_v10 = vpop.eup %3109  ;;  %v4086_v3 = vadd.f32 %v1351_v63, %v486_v49  ;;  %v3237_v63 = vld [vmem:[%s3306_s26 + $0x48] sm:$0xff] }
 0x417   : > { %1439 = vrot.lane.b32.xlu1 %v4084_v10, %s3253_s27 }
 0x418   : > { %3111 = vtanh.f32 %v4086_v3  ;;  %2865 = vmatmul.msk.f32.gmra.mxu3 %vm258_vm1, %v3233_v22 }
 0x419   : > { %2925 = vmatmul.msk.f32.gmra.mxu2 %vm600_vm2, %v4090_v42 }
 0x41e   : > { %v4097_v11 = vpop.eup %3111 }
 0x41f   : > { %1441 = vrot.lane.b32.xlu0 %v4097_v11, %s3253_s27 }
 0x420   : > { %2866 = vmatmul.msk.f32.gmra.mxu3 %vm258_vm1, %v3234_v54  ;;  %v3238_v54 = vld [vmem:[%s3306_s26 + $0x50] sm:$0xff] }
 0x428   : > { %2867 = vmatmul.msk.f32.gmra.mxu3 %vm258_vm1, %v3235_v30 }
 0x430   : > { %2868 = vmatmul.msk.f32.gmra.mxu3 %vm258_vm1, %v3236_v41 }
 0x438   : > { %2869 = vmatmul.msk.f32.gmra.mxu3 %vm258_vm1, %v3237_v63 }
 0x440   : > { %2870 = vmatmul.msk.f32.gmra.mxu3 %vm258_vm1, %v3238_v54  ;;  %v3241_v54 = vld [vmem:[%s3306_s26 + $0x68] sm:$0xff] }
 0x448   : > { %v1430_v18 = vpop.permute.xlu2 %1429 }
 0x449   : > { %v1477_v49 = vmul.f32 %v1430_v18, %v3791_v9  ;;  %v3239_v9 = vld [vmem:[%s3306_s26 + $0x58] sm:$0xff]  ;;  %v3240_v18 = vld [vmem:[%s3306_s26 + $0x60] sm:$0xff] }
 0x44a   : > { %2871 = vmatmul.msk.f32.gmra.mxu3 %vm258_vm1, %v3239_v9 }
 0x44b   : > { %v1354_v6 = vpop.f32.mrf.mxu2  ;;  %1514 = vrot.lane.b32.xlu2 %v1477_v49, %s3253_s27 }
 0x44c   : > { %v4117_v22 = vadd.f32 %v1354_v6, %v489_v12  ;;  %v492_v6 = vadd.f32 %v3952_v7, %v3994_v36  ;;  %v3242_v7 = vld [vmem:[%s3306_s26 + $0x70] sm:$0xff] }
 0x44e   : > { %3113 = vtanh.f32 %v4117_v22 }
 0x452   : > { %2872 = vmatmul.msk.f32.gmra.mxu3 %vm258_vm1, %v3240_v18 }
 0x454   : > { %v4122_v30 = vpop.eup %3113 }
 0x455   : > { %1443 = vrot.lane.b32.xlu2 %v4122_v30, %s3253_s27 }
 0x45a   : > { %v1357_v38 = vpop.f32.mrf.mxu2  ;;  %2873 = vmatmul.msk.f32.gmra.mxu3 %vm258_vm1, %v3241_v54 }
 0x45b   : > { %v4140_v9 = vadd.f32 %v1357_v38, %v492_v6 }
 0x45d   : > { %3115 = vtanh.f32 %v4140_v9 }
 0x461   : > { %v1436_v41 = vpop.permute.xlu2 %1435 }
 0x462   : > { %v1480_v49 = vmul.f32 %v1436_v41, %v3820_v40  ;;  %v498_v40 = vadd.f32 %v3968_v17, %v3994_v36  ;;  %2874 = vmatmul.msk.f32.gmra.mxu3 %vm258_vm1, %v3242_v7  ;;  %v495_v17 = vadd.f32 %v3961_v39, %v3994_v36  ;;  %v3243_v39 = vld [vmem:[%s3306_s26 + $0x78] sm:$0xff]  ;;  %v2928_v7 = vld [vmem:[%s4981_s4 + $0x20] sm:$0xff] }
 0x463   : > { %v4131_v63 = vpop.permute.xlu0 %1280 }
 0x464   : > { %5022 = vst [vmem:[#allocation4_spill] sm:$0xff] %v4131_v63  ;;  %v1360_v12 = vpop.f32.mrf.mxu2  ;;  %1520 = vrot.lane.b32.xlu2 %v1480_v49, %s3253_s27  ;;  %2926 = vmatmul.msk.f32.gmra.mxu2 %vm600_vm2, %v4131_v63 }
 0x465   : > { %v4163_v6 = vadd.f32 %v1360_v12, %v495_v17  ;;  %v2929_v12 = vld [vmem:[%s4981_s4 + $0x28] sm:$0xff] }
 0x46a   : > { %2875 = vmatmul.msk.f32.gmra.mxu3 %vm258_vm1, %v3243_v39  ;;  %v501_v39 = vadd.f32 %v3970_v20, %v3994_v36 }
 0x46b   : > { %v1432_v41 = vpop.permute.xlu0 %1431  ;;  %v4144_v18 = vpop.permute.xlu1 %1282 }
 0x46c   : > { %5023 = vst [vmem:[#allocation3_spill] sm:$0xff] %v4144_v18  ;;  %v1363_v15 = vpop.f32.mrf.mxu2  ;;  %v1478_v49 = vmul.f32 %v1432_v41, %v3802_v32  ;;  %2927 = vmatmul.msk.f32.gmra.mxu2 %vm600_vm2, %v4144_v18  ;;  %v2931_v32 = vld [vmem:[%s4981_s4 + $0x38] sm:$0xff] }
 0x46d   : > { %v4149_v63 = vadd.f32 %v1363_v15, %v498_v40  ;;  %1590 = vmatpush.msra.mxu3 %v2931_v32  ;;  %v4161_v15 = vpop.eup %3115 }
 0x46e   : > { %1516 = vrot.lane.b32.xlu1 %v1478_v49, %s3253_s27 }
 0x46f   : > { %3117 = vtanh.f32 %v4149_v63 }
 0x470   : > { %3119 = vtanh.f32 %v4163_v6 }
 0x473   : > { %v1434_v38 = vpop.permute.xlu1 %1433 }
 0x474   : > { %v1479_v54 = vmul.f32 %v1434_v38, %v3810_v23  ;;  %v2930_v23 = vld [vmem:[%s4981_s4 + $0x30] sm:$0xff]  ;;  %v4191_v38 = vpop.f32.mrf.mxu3 }
 0x475   : > { %v4166_v40 = vpop.eup %3117  ;;  %1591 = vmatpush.msra.mxu3 %v2930_v23  ;;  %5024 = vst [vmem:[#allocation6_spill] sm:$0xff] %v4191_v38 }
 0x476   : > { %1449 = vrot.lane.b32.xlu2 %v4166_v40, %s3253_s27  ;;  %1445 = vrot.lane.b32.xlu1 %v4161_v15, %s3253_s27  ;;  %v4176_v41 = vpop.eup %3119 }
 0x477   : > { %1518 = vrot.lane.b32.xlu0 %v1479_v54, %s3253_s27  ;;  %1592 = vmatpush.msra.mxu3 %v2929_v12 }
 0x479   : > { %1593 = vmatpush.msra.mxu3 %v2928_v7 }
 0x47c   : > { %v4203_v7 = vpop.f32.mrf.mxu3 }
 0x47d   : > { %5025 = vst [vmem:[#allocation5_spill] sm:$0xff] %v4203_v7 }
 0x47f   : > { %1447 = vrot.lane.b32.xlu0 %v4176_v41, %s3253_s27 }
 0x481   : > { %v1438_v49 = vpop.permute.xlu0 %1437 }
 0x482   : > { %v1481_v17 = vmul.f32 %v1438_v49, %v3833_v33  ;;  %v504_v49 = vadd.f32 %v3972_v58, %v3994_v36 }
 0x484   : > { %1522 = vrot.lane.b32.xlu1 %v1481_v17, %s3253_s27 }
 0x489   : > { %v1440_v32 = vpop.permute.xlu1 %1439 }
 0x48a   : > { %v1482_v54 = vmul.f32 %v1440_v32, %v3843_v51 }
 0x48c   : > { %v1366_v23 = vpop.f32.mrf.mxu2  ;;  %1524 = vrot.lane.b32.xlu0 %v1482_v54, %s3253_s27 }
 0x48d   : > { %v4197_v18 = vadd.f32 %v1366_v23, %v501_v39  ;;  %v4219_v39 = vpop.f32.mrf.mxu3 }
 0x48e   : > { %5026 = vst [vmem:[#allocation7_spill] sm:$0xff] %v4219_v39 }
 0x48f   : > { %3121 = vtanh.f32 %v4197_v18 }
 0x491   : > { %v1442_v33 = vpop.permute.xlu0 %1441 }
 0x492   : > { %v1483_v12 = vmul.f32 %v1442_v33, %v3871_v0  ;;  %v507_v0 = vadd.f32 %v3974_v31, %v3994_v36 }
 0x494   : > { %1526 = vrot.lane.b32.xlu2 %v1483_v12, %s3253_s27  ;;  %v1369_v51 = vpop.f32.mrf.mxu2 }
 0x495   : > { %v4206_v17 = vpop.eup %3121  ;;  %v4208_v20 = vadd.f32 %v1369_v51, %v504_v49  ;;  %v4229_v31 = vpop.f32.mrf.mxu3 }
 0x496   : > { %1451 = vrot.lane.b32.xlu1 %v4206_v17, %s3253_s27  ;;  %5027 = vst [vmem:[#allocation10_spill] sm:$0xff] %v4229_v31 }
 0x497   : > { %3123 = vtanh.f32 %v4208_v20 }
 0x49c   : > { %v1372_v32 = vpop.f32.mrf.mxu2 }
 0x49d   : > { %v4215_v54 = vpop.eup %3123  ;;  %v4217_v58 = vadd.f32 %v1372_v32, %v507_v0  ;;  %v4232_v51 = vpop.f32.mrf.mxu3 }
 0x49e   : > { %1453 = vrot.lane.b32.xlu0 %v4215_v54, %s3253_s27  ;;  %5028 = vst [vmem:[#allocation8_spill] sm:$0xff] %v4232_v51 }
 0x49f   : > { %3125 = vtanh.f32 %v4217_v58 }
 0x4a5   : > { %v4224_v23 = vpop.eup %3125  ;;  %v1515_v33 = vpop.permute.xlu2 %1514 }
 0x4a6   : > { %1455 = vrot.lane.b32.xlu2 %v4224_v23, %s3253_s27  ;;  %2932 = vmatmul.msk.f32.vlgmr.msra.gmra.mxu3 %vm600_vm2, %v1515_v33  ;;  %v4235_v0 = vpop.f32.mrf.mxu3 }
 0x4a7   : > { %5029 = vst [vmem:[#allocation9_spill] sm:$0xff] %v4235_v0 }
 0x4ae   : > { %v4237_v32 = vpop.f32.mrf.mxu3 }
 0x4af   : > { %v1444_v12 = vpop.permute.xlu2 %1443  ;;  %5030 = vst [vmem:[#allocation11_spill] sm:$0xff] %v4237_v32 }
 0x4b0   : > { %v1484_v49 = vmul.f32 %v1444_v12, %v3898_v55  ;;  %v510_v55 = vadd.f32 %v3980_v37, %v3994_v36 }
 0x4b2   : > { %1528 = vrot.lane.b32.xlu1 %v1484_v49, %s3253_s27 }
 0x4b6   : > { %v4239_v39 = vpop.f32.mrf.mxu3 }
 0x4b7   : > { %5031 = vst [vmem:[#allocation12_spill] sm:$0xff] %v4239_v39 }
 0x4be   : > { %v4241_v7 = vpop.f32.mrf.mxu3  ;;  %v1521_v51 = vpop.permute.xlu2 %1520 }
 0x4bf   : > { %5032 = vst [vmem:[#allocation13_spill] sm:$0xff] %v4241_v7 }
 0x4c6   : > { %v4244_v33 = vpop.f32.mrf.mxu3 }
 0x4c7   : > { %5033 = vst [vmem:[#allocation14_spill] sm:$0xff] %v4244_v33  ;;  %v513_v33 = vadd.f32 %v3986_v4, %v3994_v36 }
 0x4e0   : > { %v1517_v38 = vpop.permute.xlu1 %1516 }
 0x4e1   : > { %2933 = vmatmul.msk.f32.gmra.mxu3 %vm600_vm2, %v1517_v38  ;;  %v4254_v38 = vpop.f32.mrf.mxu3 }
 0x4e7   : > { %v1375_v12 = vpop.f32.mrf.mxu2 }
 0x4e8   : > { %v4248_v31 = vadd.f32 %v1375_v12, %v510_v55  ;;  %v1446_v49 = vpop.permute.xlu1 %1445  ;;  %v1450_v55 = vpop.permute.xlu2 %1449 }
 0x4e9   : > { %v1519_v0 = vpop.permute.xlu0 %1518  ;;  %v1485_v32 = vmul.f32 %v1446_v49, %v3915_v8  ;;  %v1487_v4 = vmul.f32 %v1450_v55, %v3941_v29  ;;  %v4269_v36 = vpop.f32.mrf.mxu3 }
 0x4ea   : > { %3127 = vtanh.f32 %v4248_v31  ;;  %2934 = vmatmul.msk.f32.gmra.mxu3 %vm600_vm2, %v1519_v0 }
 0x4eb   : > { %1530 = vrot.lane.b32.xlu0 %v1485_v32, %s3253_s27 }
 0x4ef   : > { %v1378_v37 = vpop.f32.mrf.mxu2 }
 0x4f0   : > { %v4258_v7 = vpop.eup %3127  ;;  %v4260_v12 = vadd.f32 %v1378_v37, %v513_v33  ;;  %v1527_v32 = vpop.permute.xlu2 %1526 }
 0x4f1   : > { %v1448_v39 = vpop.permute.xlu0 %1447  ;;  %1457 = vrot.lane.b32.xlu1 %v4258_v7, %s3253_s27  ;;  %v4278_v49 = vpop.f32.mrf.mxu3 }
 0x4f2   : > { %3129 = vtanh.f32 %v4260_v12  ;;  %v1486_v8 = vmul.f32 %v1448_v39, %v3930_v34  ;;  %2935 = vmatmul.msk.f32.gmra.mxu3 %vm600_vm2, %v1521_v51 }
 0x4f4   : > { %1532 = vrot.lane.b32.xlu2 %v1486_v8, %s3253_s27 }
 0x4f6   : > { %v1523_v33 = vpop.permute.xlu1 %1522 }
 0x4f8   : > { %v4271_v0 = vpop.eup %3129 }
 0x4f9   : > { %1534 = vrot.lane.b32.xlu1 %v1487_v4, %s3253_s27  ;;  %1459 = vrot.lane.b32.xlu0 %v4271_v0, %s3253_s27  ;;  %v4285_v55 = vpop.f32.mrf.mxu3 }
 0x4fa   : > { %2936 = vmatmul.msk.f32.gmra.mxu3 %vm600_vm2, %v1523_v33 }
 0x4fe   : > { %v1525_v39 = vpop.permute.xlu0 %1524 }
 0x500   : > { %v1456_v34 = vpop.permute.xlu2 %1455 }
 0x501   : > { %v1490_v51 = vmul.f32 %v1456_v34, %v3964_v45  ;;  %v4289_v45 = vpop.f32.mrf.mxu3 }
 0x502   : > { %2937 = vmatmul.msk.f32.gmra.mxu3 %vm600_vm2, %v1525_v39 }
 0x503   : > { %1540 = vrot.lane.b32.xlu1 %v1490_v51, %s3253_s27 }
 0x508   : > { %v1452_v29 = vpop.permute.xlu1 %1451 }
 0x509   : > { %v1488_v37 = vmul.f32 %v1452_v29, %v3950_v56  ;;  %v4291_v33 = vpop.f32.mrf.mxu3 }
 0x50a   : > { %2938 = vmatmul.msk.f32.gmra.mxu3 %vm600_vm2, %v1527_v32 }
 0x50b   : > { %1536 = vrot.lane.b32.xlu2 %v1488_v37, %s3253_s27 }
 0x510   : > { %v1454_v8 = vpop.permute.xlu0 %1453 }
 0x511   : > { %v1489_v4 = vmul.f32 %v1454_v8, %v3957_v28 }
 0x513   : > { %1538 = vrot.lane.b32.xlu0 %v1489_v4, %s3253_s27 }
 0x524   : > { %v1529_v34 = vpop.permute.xlu1 %1528 }
 0x525   : > { %2939 = vmatmul.msk.f32.gmra.mxu3 %vm600_vm2, %v1529_v34 }
 0x529   : > { %v1595_v39 = vpop.f32.mrf.mxu3 }
 0x52a   : > { %1659 = vrot.lane.b32.xlu1 %v1595_v39, %s3253_s27 }
 0x54e   : > { %v1533_v28 = vpop.permute.xlu2 %1532 }
 0x55d   : > { %v1531_v56 = vpop.permute.xlu0 %1530 }
 0x55e   : > { %2940 = vmatmul.msk.f32.gmra.mxu3 %vm600_vm2, %v1531_v56 }
 0x563   : > { %v1458_v32 = vpop.permute.xlu1 %1457 }
 0x564   : > { %v1491_v51 = vmul.f32 %v1458_v32, %v4018_v27  ;;  %v1598_v29 = vpop.f32.mrf.mxu3  ;;  %v1857_v27 = vmul.f32 %v4097_v11, %v3945_v48  ;;  %v1851_v32 = vmul.f32 %v4012_v62, %v3889_v25  ;;  %v1852_v48 = vmul.f32 %v4030_v19, %v3887_v47 }
 0x565   : > { %v1537_v56 = vpop.permute.xlu2 %1536  ;;  %v1853_v25 = vmul.f32 %v4044_v16, %v3905_v60 }
 0x566   : > { %2941 = vmatmul.msk.f32.gmra.mxu3 %vm600_vm2, %v1533_v28  ;;  %1542 = vrot.lane.b32.xlu2 %v1491_v51, %s3253_s27 }
 0x56b   : > { %v1460_v37 = vpop.permute.xlu0 %1459  ;;  %v1535_v34 = vpop.permute.xlu1 %1534 }
 0x56c   : > { %v1492_v8 = vmul.f32 %v1460_v37, %v4028_v1 }
 0x56d   : > { %v1601_v4 = vpop.f32.mrf.mxu3 }
 0x56e   : > { %1544 = vrot.lane.b32.xlu0 %v1492_v8, %s3253_s27  ;;  %1661 = vrot.lane.b32.xlu2 %v1598_v29, %s3253_s27  ;;  %v1854_v8 = vmul.f32 %v4054_v14, %v3913_v61 }
 0x56f   : > { %2942 = vmatmul.msk.f32.gmra.mxu3 %vm600_vm2, %v1535_v34  ;;  %v1856_v34 = vmul.f32 %v4084_v10, %v3934_v57 }
 0x575   : > { %v1604_v39 = vpop.f32.mrf.mxu3  ;;  %v1541_v28 = vpop.permute.xlu1 %1540 }
 0x576   : > { %1665 = vrot.lane.b32.xlu1 %v1604_v39, %s3253_s27  ;;  %1663 = vrot.lane.b32.xlu0 %v1601_v4, %s3253_s27  ;;  %v1855_v4 = vmul.f32 %v4069_v46, %v3922_v24 }
 0x577   : > { %2943 = vmatmul.msk.f32.gmra.mxu3 %vm600_vm2, %v1537_v56 }
 0x57d   : > { %v1607_v1 = vpop.f32.mrf.mxu3 }
 0x57e   : > { %1895 = vrot.lane.b32.xlu1 %v1857_v27, %s3254_s28  ;;  %1667 = vrot.lane.b32.xlu2 %v1607_v1, %s3253_s27 }
 0x57f   : > { %1883 = vrot.lane.b32.xlu0 %v1851_v32, %s3254_s28 }
 0x585   : > { %v1539_v51 = vpop.permute.xlu0 %1538  ;;  %v1610_v29 = vpop.f32.mrf.mxu3 }
 0x586   : > { %2944 = vmatmul.msk.f32.gmra.mxu3 %vm600_vm2, %v1539_v51 }
 0x587   : > { %1669 = vrot.lane.b32.xlu0 %v1610_v29, %s3253_s27 }
 0x58d   : > { %v1613_v37 = vpop.f32.mrf.mxu3 }
 0x58e   : > { %1671 = vrot.lane.b32.xlu1 %v1613_v37, %s3253_s27  ;;  %2945 = vmatmul.msk.f32.gmra.mxu3 %vm600_vm2, %v1541_v28 }
 0x58f   : > { %1885 = vrot.lane.b32.xlu0 %v1852_v48, %s3254_s28 }
 0x597   : > { %1887 = vrot.lane.b32.xlu0 %v1853_v25, %s3254_s28 }
 0x59c   : > { %v1660_v56 = vpop.permute.xlu1 %1659 }
 0x59d   : > { %v1707_v51 = vadd.f32 %v1660_v56, %v4002_v5 }
 0x59f   : > { %1889 = vrot.lane.b32.xlu0 %v1854_v8, %s3254_s28  ;;  %3131 = vtanh.f32 %v1707_v51 }
 0x5a5   : > { %v3132_v8 = vpop.eup %3131 }
 0x5a7   : > { %1891 = vrot.lane.b32.xlu0 %v1855_v4, %s3254_s28 }
 0x5a8   : > { %v1616_v47 = vpop.f32.mrf.mxu3 }
 0x5a9   : > { %1673 = vrot.lane.b32.xlu1 %v1616_v47, %s3253_s27 }
 0x5af   : > { %1893 = vrot.lane.b32.xlu0 %v1856_v34, %s3254_s28 }
 0x5c0   : > { %v1543_v60 = vpop.permute.xlu2 %1542 }
 0x5c1   : > { %2946 = vmatmul.msk.f32.gmra.mxu3 %vm600_vm2, %v1543_v60 }
 0x5c8   : > { %v1662_v28 = vpop.permute.xlu2 %1661 }
 0x5c9   : > { %v1708_v48 = vadd.f32 %v1662_v28, %v4014_v43 }
 0x5cb   : > { %3133 = vtanh.f32 %v1708_v48 }
 0x5d1   : > { %v3134_v34 = vpop.eup %3133 }
 0x5e0   : > { %v1545_v39 = vpop.permute.xlu0 %1544 }
 0x5e1   : > { %v1619_v61 = vpop.f32.mrf.mxu3  ;;  %2947 = vmatmul.msk.f32.gmra.mxu3 %vm600_vm2, %v1545_v39 }
 0x5e2   : > { %1675 = vrot.lane.b32.xlu1 %v1619_v61, %s3253_s27  ;;  %v1668_v61 = vpop.permute.xlu2 %1667 }
 0x5e8   : > { %v1666_v1 = vpop.permute.xlu1 %1665  ;;  %v1664_v47 = vpop.permute.xlu0 %1663 }
 0x5e9   : > { %v1622_v24 = vpop.f32.mrf.mxu3  ;;  %v1709_v5 = vadd.f32 %v1664_v47, %v4026_v50  ;;  %v1710_v43 = vadd.f32 %v1666_v1, %v4039_v2  ;;  %v1858_v1 = vmul.f32 %v4122_v30, %v3976_v52  ;;  %v2950_v52 = vld [vmem:[%s4980_s3 + $0x50] sm:$0xff] }
 0x5ea   : > { %1677 = vrot.lane.b32.xlu1 %v1622_v24, %s3253_s27  ;;  %v1711_v24 = vadd.f32 %v1668_v61, %v4056_v59  ;;  %v2951_v59 = vld [vmem:[%s4980_s3 + $0x58] sm:$0xff] }
 0x5eb   : > { %2044 = vmatpush.msra.mxu0 %v2951_v59 }
 0x5ed   : > { %2045 = vmatpush.msra.mxu0 %v2950_v52 }
 0x5f0   : > { %v4339_v32 = vpop.permute.xlu1 %1895 }
 0x5f1   : > { %v1884_v39 = vpop.permute.xlu0 %1883 }
 0x5f2   : > { %v1625_v27 = vpop.f32.mrf.mxu3 }
 0x5f3   : > { %1679 = vrot.lane.b32.xlu1 %v1625_v27, %s3253_s27 }
 0x5f9   : > { %v1670_v50 = vpop.permute.xlu0 %1669 }
 0x5fa   : > { %v1628_v57 = vpop.f32.mrf.mxu3  ;;  %v1712_v27 = vadd.f32 %v1670_v50, %v4071_v26 }
 0x5fb   : > { %1681 = vrot.lane.b32.xlu1 %v1628_v57, %s3253_s27 }
 0x600   : > { %v1672_v37 = vpop.permute.xlu1 %1671 }
 0x601   : > { %v1713_v25 = vadd.f32 %v1672_v37, %v4086_v3  ;;  %v1886_v51 = vpop.permute.xlu0 %1885  ;;  %v1739_v37 = vsub.f32 1.0, %v4012_v62 }
 0x603   : > { %3135 = vtanh.f32 %v1713_v25 }
 0x604   : > { %3137 = vtanh.f32 %v1709_v5  ;;  %v1740_v5 = vsub.f32 1.0, %v4030_v19 }
 0x605   : > { %3139 = vtanh.f32 %v1710_v43 }
 0x606   : > { %3141 = vtanh.f32 %v1711_v24 }
 0x607   : > { %3143 = vtanh.f32 %v1712_v27 }
 0x609   : > { %v1631_v29 = vpop.f32.mrf.mxu3  ;;  %v3136_v60 = vpop.eup %3135 }
 0x60a   : > { %1683 = vrot.lane.b32.xlu2 %v1631_v29, %s3253_s27  ;;  %v3138_v3 = vpop.eup %3137  ;;  %v1888_v26 = vpop.permute.xlu0 %1887 }
 0x60b   : > { %v3140_v56 = vpop.eup %3139 }
 0x60c   : > { %v3142_v57 = vpop.eup %3141 }
 0x60d   : > { %v3144_v2 = vpop.eup %3143 }
 0x611   : > { %v1634_v4 = vpop.f32.mrf.mxu3 }
 0x612   : > { %1685 = vrot.lane.b32.xlu0 %v1634_v4, %s3253_s27  ;;  %1771 = vrot.lane.b32.xlu2 %v3132_v8, %s3252_s14  ;;  %v1890_v47 = vpop.permute.xlu0 %1889 }
 0x61a   : > { %1773 = vrot.lane.b32.xlu2 %v3134_v34, %s3252_s14  ;;  %1783 = vrot.lane.b32.xlu0 %v3136_v60, %s3252_s14  ;;  %v1892_v24 = vpop.permute.xlu0 %1891 }
 0x61b   : > { %v1674_v28 = vpop.permute.xlu1 %1673 }
 0x61c   : > { %v1714_v8 = vadd.f32 %v1674_v28, %v4117_v22 }
 0x61e   : > { %3145 = vtanh.f32 %v1714_v8 }
 0x622   : > { %1775 = vrot.lane.b32.xlu2 %v3138_v3, %s3252_s14  ;;  %v1894_v59 = vpop.permute.xlu0 %1893 }
 0x624   : > { %v3146_v3 = vpop.eup %3145 }
 0x62a   : > { %1777 = vrot.lane.b32.xlu2 %v3140_v56, %s3252_s14 }
 0x632   : > { %1779 = vrot.lane.b32.xlu2 %v3142_v57, %s3252_s14 }
 0x63a   : > { %1781 = vrot.lane.b32.xlu2 %v3144_v2, %s3252_s14 }
 0x642   : > { %1897 = vrot.lane.b32.xlu2 %v1858_v1, %s3254_s28 }
 0x644   : > { %v1637_v27 = vpop.f32.mrf.mxu3 }
 0x654   : > { %v1676_v34 = vpop.permute.xlu1 %1675 }
 0x655   : > { %v1715_v43 = vadd.f32 %v1676_v34, %v4140_v9  ;;  %v1742_v9 = vsub.f32 1.0, %v4054_v14  ;;  %v2949_v14 = vld [vmem:[%s4980_s3 + $0x48] sm:$0xff]  ;;  %v1744_v34 = vsub.f32 1.0, %v4084_v10 }
 0x656   : > { %2046 = vmatpush.msra.mxu0 %v2949_v14 }
 0x657   : > { %3147 = vtanh.f32 %v1715_v43 }
 0x65c   : > { %v1678_v19 = vpop.permute.xlu1 %1677 }
 0x65d   : > { %v3148_v57 = vpop.eup %3147 }
 0x664   : > { %v4363_v29 = vpop.permute.xlu2 %1683  ;;  %v1640_v28 = vpop.f32.mrf.mxu3 }
 0x66c   : > { %v1772_v48 = vpop.permute.xlu2 %1771 }
 0x66d   : > { %v1819_v25 = vmul.f32 %v1772_v48, %v1739_v37  ;;  %v1680_v37 = vpop.permute.xlu1 %1679 }
 0x66f   : > { %v4367_v4 = vadd.f32 %v1884_v39, %v1819_v25  ;;  %v1741_v39 = vsub.f32 1.0, %v4044_v16  ;;  %v1716_v16 = vadd.f32 %v1678_v19, %v4163_v6  ;;  %v1743_v6 = vsub.f32 1.0, %v4069_v46 }
 0x671   : > { %1968 = vrot.lane.b32.xlu1 %v4367_v4, %s3253_s27  ;;  %3149 = vtanh.f32 %v1716_v16  ;;  %v1746_v16 = vsub.f32 1.0, %v4122_v30  ;;  %v1747_v30 = vsub.f32 1.0, %v4161_v15 }
 0x674   : > { %v1774_v62 = vpop.permute.xlu2 %1773 }
 0x675   : > { %v1820_v60 = vmul.f32 %v1774_v62, %v1740_v5  ;;  %v1682_v46 = vpop.permute.xlu1 %1681 }
 0x677   : > { %v4376_v22 = vadd.f32 %v1886_v51, %v1820_v60  ;;  %v3150_v5 = vpop.eup %3149  ;;  %v1718_v60 = vadd.f32 %v1682_v46, %v4197_v18  ;;  %v1719_v18 = vadd.f32 %v4363_v29, %v4208_v20  ;;  %v1864_v29 = vmul.f32 %v4224_v23, %v4090_v42 }
 0x679   : > { %1970 = vrot.lane.b32.xlu2 %v4376_v22, %s3253_s27  ;;  %1785 = vrot.lane.b32.xlu1 %v3146_v3, %s3252_s14 }
 0x67c   : > { %v1776_v61 = vpop.permute.xlu2 %1775 }
 0x67d   : > { %v1821_v56 = vmul.f32 %v1776_v61, %v1741_v39  ;;  %v1745_v61 = vsub.f32 1.0, %v4097_v11  ;;  %v2948_v11 = vld [vmem:[%s4980_s3 + $0x40] sm:$0xff] }
 0x67e   : > { %2047 = vmatpush.msra.mxu0 %v2948_v11 }
 0x67f   : > { %v4382_v50 = vadd.f32 %v1888_v26, %v1821_v56  ;;  %v1859_v26 = vmul.f32 %v4161_v15, %v3982_v53  ;;  %v1717_v53 = vadd.f32 %v1680_v37, %v4149_v63  ;;  %v1748_v15 = vsub.f32 1.0, %v4176_v41 }
 0x681   : > { %1972 = vrot.lane.b32.xlu0 %v4382_v50, %s3253_s27  ;;  %1687 = vrot.lane.b32.xlu1 %v1637_v27, %s3253_s27  ;;  %3151 = vtanh.f32 %v1717_v53  ;;  %v5034_v27 = vld [vmem:[#allocation4_spill] sm:$0xff] }
 0x682   : > { %1787 = vrot.lane.b32.xlu2 %v3148_v57, %s3252_s14  ;;  %3153 = vtanh.f32 %v1718_v60 }
 0x683   : > { %3155 = vtanh.f32 %v1719_v18 }
 0x684   : > { %v1778_v2 = vpop.permute.xlu2 %1777  ;;  %v1686_v8 = vpop.permute.xlu0 %1685 }
 0x685   : > { %v1822_v1 = vmul.f32 %v1778_v2, %v1742_v9  ;;  %v1720_v20 = vadd.f32 %v1686_v8, %v4217_v58  ;;  %v1865_v58 = vmul.f32 %v4258_v7, %v5034_v27 }
 0x687   : > { %v4390_v51 = vadd.f32 %v1890_v47, %v1822_v1  ;;  %v1860_v47 = vmul.f32 %v4176_v41, %v3996_v21  ;;  %v1861_v21 = vmul.f32 %v4166_v40, %v4005_v35  ;;  %v3152_v3 = vpop.eup %3151  ;;  %3157 = vtanh.f32 %v1720_v20 }
 0x688   : > { %v3154_v35 = vpop.eup %3153 }
 0x689   : > { %1899 = vrot.lane.b32.xlu0 %v1859_v26, %s3254_s28  ;;  %1974 = vrot.lane.b32.xlu1 %v4390_v51, %s3253_s27 }
 0x68a   : > { %1689 = vrot.lane.b32.xlu2 %v1640_v28, %s3253_s27 }
 0x68c   : > { %v1780_v48 = vpop.permute.xlu2 %1779  ;;  %v1784_v39 = vpop.permute.xlu0 %1783 }
 0x68d   : > { %v1823_v25 = vmul.f32 %v1780_v48, %v1743_v6  ;;  %v1825_v10 = vmul.f32 %v1784_v39, %v1745_v61 }
 0x68f   : > { %v4403_v52 = vadd.f32 %v1892_v24, %v1823_v25  ;;  %v1862_v24 = vmul.f32 %v4206_v17, %v4061_v13  ;;  %v4427_v56 = vadd.f32 %v4339_v32, %v1825_v10  ;;  %v1863_v13 = vmul.f32 %v4215_v54, %v4076_v44  ;;  %v3156_v32 = vpop.eup %3155  ;;  %v5035_v44 = vld [vmem:[#allocation3_spill] sm:$0xff] }
 0x690   : > { %v3158_v19 = vpop.eup %3157  ;;  %v1866_v57 = vmul.f32 %v4271_v0, %v5035_v44 }
 0x691   : > { %1901 = vrot.lane.b32.xlu1 %v1860_v47, %s3254_s28  ;;  %1789 = vrot.lane.b32.xlu0 %v3150_v5, %s3252_s14 }
 0x692   : > { %1976 = vrot.lane.b32.xlu2 %v4403_v52, %s3253_s27 }
 0x694   : > { %v1782_v62 = vpop.permute.xlu2 %1781 }
 0x695   : > { %v1824_v63 = vmul.f32 %v1782_v62, %v1744_v34 }
 0x697   : > { %v4413_v43 = vadd.f32 %v1894_v59, %v1824_v63 }
 0x699   : > { %1903 = vrot.lane.b32.xlu1 %v1861_v21, %s3254_s28  ;;  %1791 = vrot.lane.b32.xlu0 %v3152_v3, %s3252_s14  ;;  %v1749_v3 = vsub.f32 1.0, %v4166_v40 }
 0x69a   : > { %1978 = vrot.lane.b32.xlu2 %v4413_v43, %s3253_s27 }
 0x69c   : > { %v1898_v9 = vpop.permute.xlu2 %1897 }
 0x6a1   : > { %1905 = vrot.lane.b32.xlu1 %v1862_v24, %s3254_s28  ;;  %1793 = vrot.lane.b32.xlu0 %v3154_v35, %s3252_s14  ;;  %v1750_v24 = vsub.f32 1.0, %v4206_v17  ;;  %v1752_v17 = vsub.f32 1.0, %v4224_v23 }
 0x6a2   : > { %1980 = vrot.lane.b32.xlu2 %v4427_v56, %s3253_s27 }
 0x6a9   : > { %1907 = vrot.lane.b32.xlu1 %v1863_v13, %s3254_s28  ;;  %1795 = vrot.lane.b32.xlu0 %v3156_v32, %s3252_s14  ;;  %v1751_v13 = vsub.f32 1.0, %v4215_v54 }
 0x6b1   : > { %1909 = vrot.lane.b32.xlu1 %v1864_v29, %s3254_s28  ;;  %1797 = vrot.lane.b32.xlu0 %v3158_v19, %s3252_s14 }
 0x6b9   : > { %1911 = vrot.lane.b32.xlu1 %v1865_v58, %s3254_s28 }
 0x6c1   : > { %1913 = vrot.lane.b32.xlu1 %v1866_v57, %s3254_s28 }
 0x6d3   : > { %v4451_v2 = vpop.permute.xlu2 %1970 }
 0x6dc   : > { %v1788_v42 = vpop.permute.xlu2 %1787 }
 0x6dd   : > { %v1827_v25 = vmul.f32 %v1788_v42, %v1747_v30 }
 0x6e3   : > { %v4453_v1 = vpop.permute.xlu1 %1968 }
 0x6e4   : > { %2952 = vmatmul.msk.f32.vlgmr.msra.gmra.mxu0 %vm600_vm2, %v4453_v1  ;;  %v1690_v6 = vpop.permute.xlu2 %1689 }
 0x6e5   : > { %v1722_v53 = vadd.f32 %v1690_v6, %v4260_v12 }
 0x6eb   : > { %v1786_v59 = vpop.permute.xlu1 %1785 }
 0x6ec   : > { %v1826_v26 = vmul.f32 %v1786_v59, %v1746_v16  ;;  %2953 = vmatmul.msk.f32.gmra.mxu0 %vm600_vm2, %v4451_v2  ;;  %v5036_v16 = vld [vmem:[#allocation2_spill] sm:$0xff] }
 0x6ed   : > { %v4527_v23 = vperm.slane %v5036_v16, 3  ;;  %v5037_v59 = vld [vmem:[#allocation6_spill] sm:$0xff] }
 0x6ee   : > { %v4460_v28 = vadd.f32 %v1898_v9, %v1826_v26 }
 0x6ef   : > { %v533_v26 = vadd.f32 %v5037_v59, %v4527_v23 }
 0x6f0   : > { %1982 = vrot.lane.b32.xlu2 %v4460_v28, %s3253_s27 }
 0x6f3   : > { %v4464_v37 = vpop.permute.xlu0 %1972  ;;  %v1688_v14 = vpop.permute.xlu1 %1687 }
 0x6f4   : > { %v1721_v48 = vadd.f32 %v1688_v14, %v4248_v31  ;;  %2954 = vmatmul.msk.f32.gmra.mxu0 %vm600_vm2, %v4464_v37  ;;  %v4478_v31 = vpop.permute.xlu2 %1976 }
 0x6f6   : > { %3159 = vtanh.f32 %v1721_v48 }
 0x6f7   : > { %3161 = vtanh.f32 %v1722_v53 }
 0x6fb   : > { %v1900_v8 = vpop.permute.xlu0 %1899  ;;  %v4471_v47 = vpop.permute.xlu1 %1974 }
 0x6fc   : > { %v3160_v5 = vpop.eup %3159  ;;  %v4473_v46 = vadd.f32 %v1900_v8, %v1827_v25  ;;  %2955 = vmatmul.msk.f32.gmra.mxu0 %vm600_vm2, %v4471_v47  ;;  %v4488_v21 = vpop.permute.xlu2 %1978  ;;  %v1753_v8 = vsub.f32 1.0, %v4258_v7  ;;  %v5039_v7 = vld [vmem:[#allocation7_spill] sm:$0xff] }
 0x6fd   : > { %1799 = vrot.lane.b32.xlu0 %v3160_v5, %s3252_s14  ;;  %v3162_v62 = vpop.eup %3161  ;;  %v5038_v5 = vld [vmem:[#allocation5_spill] sm:$0xff] }
 0x6fe   : > { %1984 = vrot.lane.b32.xlu2 %v4473_v46, %s3253_s27 }
 0x703   : > { %v1790_v12 = vpop.permute.xlu0 %1789  ;;  %v1902_v34 = vpop.permute.xlu1 %1901 }
 0x704   : > { %v1828_v63 = vmul.f32 %v1790_v12, %v1748_v15  ;;  %2956 = vmatmul.msk.f32.gmra.mxu0 %vm600_vm2, %v4478_v31  ;;  %v4499_v18 = vpop.permute.xlu2 %1980  ;;  %v536_v15 = vadd.f32 %v5038_v5, %v4527_v23 }
 0x705   : > { %1801 = vrot.lane.b32.xlu0 %v3162_v62, %s3252_s14 }
 0x706   : > { %v4486_v60 = vadd.f32 %v1902_v34, %v1828_v63 }
 0x708   : > { %1986 = vrot.lane.b32.xlu2 %v4486_v60, %s3253_s27 }
 0x70b   : > { %v1792_v39 = vpop.permute.xlu0 %1791  ;;  %v1904_v41 = vpop.permute.xlu1 %1903 }
 0x70c   : > { %v1829_v61 = vmul.f32 %v1792_v39, %v1749_v3  ;;  %2957 = vmatmul.msk.f32.gmra.mxu0 %vm600_vm2, %v4488_v21 }
 0x70e   : > { %v4495_v10 = vadd.f32 %v1904_v41, %v1829_v61  ;;  %v1754_v41 = vsub.f32 1.0, %v4271_v0  ;;  %v539_v61 = vadd.f32 %v5039_v7, %v4527_v23  ;;  %v5041_v0 = vld [vmem:[#allocation8_spill] sm:$0xff] }
 0x710   : > { %1988 = vrot.lane.b32.xlu2 %v4495_v10, %s3253_s27 }
 0x713   : > { %v1794_v35 = vpop.permute.xlu0 %1793  ;;  %v1906_v11 = vpop.permute.xlu1 %1905 }
 0x714   : > { %v1830_v20 = vmul.f32 %v1794_v35, %v1750_v24  ;;  %2958 = vmatmul.msk.f32.gmra.mxu0 %vm600_vm2, %v4499_v18  ;;  %v5040_v35 = vld [vmem:[#allocation10_spill] sm:$0xff] }
 0x716   : > { %v4504_v40 = vadd.f32 %v1906_v11, %v1830_v20  ;;  %v542_v11 = vadd.f32 %v5040_v35, %v4527_v23 }
 0x718   : > { %1990 = vrot.lane.b32.xlu0 %v4504_v40, %s3253_s27 }
 0x71b   : > { %v1796_v32 = vpop.permute.xlu0 %1795  ;;  %v1908_v29 = vpop.permute.xlu1 %1907 }
 0x71c   : > { %v1831_v19 = vmul.f32 %v1796_v32, %v1751_v13 }
 0x71e   : > { %v4509_v27 = vadd.f32 %v1908_v29, %v1831_v19 }
 0x720   : > { %1992 = vrot.lane.b32.xlu1 %v4509_v27, %s3253_s27 }
 0x723   : > { %v1798_v58 = vpop.permute.xlu0 %1797  ;;  %v1910_v57 = vpop.permute.xlu1 %1909 }
 0x724   : > { %v1832_v44 = vmul.f32 %v1798_v58, %v1752_v17 }
 0x726   : > { %v4514_v9 = vadd.f32 %v1910_v57, %v1832_v44  ;;  %v545_v44 = vadd.f32 %v5041_v0, %v4527_v23 }
 0x728   : > { %1994 = vrot.lane.b32.xlu2 %v4514_v9, %s3253_s27 }
 0x72b   : > { %v1912_v12 = vpop.permute.xlu1 %1911 }
 0x733   : > { %v1914_v13 = vpop.permute.xlu1 %1913 }
 0x74a   : > { %v4518_v42 = vpop.permute.xlu2 %1982 }
 0x74b   : > { %2959 = vmatmul.msk.f32.gmra.mxu0 %vm600_vm2, %v4518_v42 }
 0x758   : > { %v4522_v54 = vpop.permute.xlu2 %1984 }
 0x759   : > { %2960 = vmatmul.msk.f32.gmra.mxu0 %vm600_vm2, %v4522_v54 }
 0x761   : > { %v2049_v14 = vpop.f32.mrf.mxu0 }
 0x762   : > { %v4531_v6 = vadd.f32 %v2049_v14, %v533_v26  ;;  %v4533_v48 = vpop.permute.xlu2 %1986  ;;  %v5042_v14 = vld [vmem:[#allocation9_spill] sm:$0xff] }
 0x763   : > { %2961 = vmatmul.msk.f32.gmra.mxu0 %vm600_vm2, %v4533_v48 }
 0x764   : > { %3163 = vtanh.f32 %v4531_v6 }
 0x769   : > { %v2052_v30 = vpop.f32.mrf.mxu0 }
 0x76a   : > { %v4538_v25 = vpop.eup %3163  ;;  %v4540_v53 = vpop.permute.xlu2 %1988  ;;  %v4549_v63 = vadd.f32 %v2052_v30, %v536_v15  ;;  %v548_v30 = vadd.f32 %v5042_v14, %v4527_v23 }
 0x76b   : > { %2962 = vmatmul.msk.f32.gmra.mxu0 %vm600_vm2, %v4540_v53  ;;  %2145 = vrot.lane.b32.xlu2 %v4538_v25, %s3253_s27 }
 0x76c   : > { %3165 = vtanh.f32 %v4549_v63 }
 0x76f   : > { %v1800_v34 = vpop.permute.xlu0 %1799 }
 0x770   : > { %v1833_v62 = vmul.f32 %v1800_v34, %v1753_v8  ;;  %v5043_v34 = vld [vmem:[#allocation11_spill] sm:$0xff] }
 0x771   : > { %v2055_v3 = vpop.f32.mrf.mxu0 }
 0x772   : > { %v4551_v39 = vadd.f32 %v1912_v12, %v1833_v62  ;;  %v4561_v32 = vadd.f32 %v2055_v3, %v539_v61  ;;  %v4567_v58 = vpop.eup %3165  ;;  %v551_v62 = vadd.f32 %v5043_v34, %v4527_v23 }
 0x774   : > { %1996 = vrot.lane.b32.xlu0 %v4551_v39, %s3253_s27 }
 0x777   : > { %v1802_v24 = vpop.permute.xlu0 %1801 }
 0x778   : > { %v1834_v20 = vmul.f32 %v1802_v24, %v1754_v41 }
 0x779   : > { %v2058_v29 = vpop.f32.mrf.mxu0 }
 0x77a   : > { %v4563_v19 = vadd.f32 %v1914_v13, %v1834_v20  ;;  %v4565_v17 = vadd.f32 %v2058_v29, %v542_v11  ;;  %v5044_v13 = vld [vmem:[#allocation12_spill] sm:$0xff] }
 0x77b   : > { %v554_v29 = vadd.f32 %v5044_v13, %v4527_v23 }
 0x77c   : > { %3167 = vtanh.f32 %v4565_v17  ;;  %2147 = vrot.lane.b32.xlu0 %v4567_v58, %s3253_s27  ;;  %1998 = vrot.lane.b32.xlu1 %v4563_v19, %s3253_s27 }
 0x77d   : > { %3169 = vtanh.f32 %v4561_v32 }
 0x781   : > { %v2061_v57 = vpop.f32.mrf.mxu0 }
 0x782   : > { %v4577_v16 = vpop.eup %3167  ;;  %v4579_v59 = vadd.f32 %v2061_v57, %v545_v44  ;;  %v4616_v35 = vpop.permute.xlu2 %1994 }
 0x783   : > { %v4581_v26 = vpop.eup %3169  ;;  %2151 = vrot.lane.b32.xlu2 %v4577_v16, %s3253_s27 }
 0x784   : > { %3171 = vtanh.f32 %v4579_v59  ;;  %2149 = vrot.lane.b32.xlu1 %v4581_v26, %s3253_s27 }
 0x789   : > { %v2064_v8 = vpop.f32.mrf.mxu0 }
 0x78a   : > { %v4590_v5 = vpop.eup %3171  ;;  %v4592_v15 = vadd.f32 %v2064_v8, %v548_v30  ;;  %v4594_v12 = vpop.permute.xlu0 %1990 }
 0x78b   : > { %2963 = vmatmul.msk.f32.gmra.mxu0 %vm600_vm2, %v4594_v12  ;;  %2153 = vrot.lane.b32.xlu0 %v4590_v5, %s3253_s27 }
 0x78c   : > { %3173 = vtanh.f32 %v4592_v15 }
 0x791   : > { %v2067_v3 = vpop.f32.mrf.mxu0 }
 0x792   : > { %v4603_v41 = vpop.eup %3173  ;;  %v4605_v7 = vadd.f32 %v2067_v3, %v551_v62  ;;  %v4607_v61 = vpop.permute.xlu1 %1992  ;;  %v563_v62 = vadd.f32 %v4254_v38, %v4527_v23 }
 0x793   : > { %2155 = vrot.lane.b32.xlu1 %v4603_v41, %s3253_s27  ;;  %2964 = vmatmul.msk.f32.gmra.mxu0 %vm600_vm2, %v4607_v61 }
 0x794   : > { %3175 = vtanh.f32 %v4605_v7 }
 0x79a   : > { %v4614_v24 = vpop.eup %3175 }
 0x79b   : > { %2157 = vrot.lane.b32.xlu0 %v4614_v24, %s3253_s27  ;;  %2965 = vmatmul.msk.f32.gmra.mxu0 %vm600_vm2, %v4616_v35 }
 0x7c5   : > { %v2146_v11 = vpop.permute.xlu2 %2145 }
 0x7c6   : > { %v2193_v20 = vmul.f32 %v2146_v11, %v4367_v4 }
 0x7c8   : > { %v2070_v0 = vpop.f32.mrf.mxu0  ;;  %2230 = vrot.lane.b32.xlu2 %v2193_v20, %s3253_s27  ;;  %v5046_v20 = vld [vmem:[#allocation13_spill] sm:$0xff] }
 0x7c9   : > { %v4626_v44 = vadd.f32 %v2070_v0, %v554_v29  ;;  %v557_v13 = vadd.f32 %v5046_v20, %v4527_v23 }
 0x7cb   : > { %3177 = vtanh.f32 %v4626_v44 }
 0x7d1   : > { %v4629_v57 = vpop.eup %3177 }
 0x7d2   : > { %2159 = vrot.lane.b32.xlu2 %v4629_v57, %s3253_s27 }
 0x7d6   : > { %v2073_v14 = vpop.f32.mrf.mxu0 }
 0x7dd   : > { %v2152_v30 = vpop.permute.xlu2 %2151 }
 0x7de   : > { %v2196_v8 = vmul.f32 %v2152_v30, %v4390_v51  ;;  %v4646_v51 = vadd.f32 %v2073_v14, %v557_v13  ;;  %v5047_v14 = vld [vmem:[#allocation14_spill] sm:$0xff]  ;;  %v2971_v13 = vld [vmem:[%s4981_s4 + $0x58] sm:$0xff] }
 0x7df   : > { %2306 = vmatpush.msra.mxu1 %v2971_v13 }
 0x7e0   : > { %v2076_v4 = vpop.f32.mrf.mxu0  ;;  %2236 = vrot.lane.b32.xlu2 %v2196_v8, %s3253_s27  ;;  %v560_v8 = vadd.f32 %v5047_v14, %v4527_v23  ;;  %v2968_v14 = vld [vmem:[%s4981_s4 + $0x40] sm:$0xff] }
 0x7e6   : > { %v4635_v34 = vpop.permute.xlu0 %1996 }
 0x7e7   : > { %5045 = vst [vmem:[#allocation4_spill] sm:$0xff] %v4635_v34  ;;  %2966 = vmatmul.msk.f32.gmra.mxu0 %vm600_vm2, %v4635_v34 }
 0x7e8   : > { %v2079_v3 = vpop.f32.mrf.mxu0 }
 0x7e9   : > { %v4641_v11 = vadd.f32 %v2079_v3, %v563_v62  ;;  %v4661_v62 = vadd.f32 %v2076_v4, %v560_v8  ;;  %v2970_v4 = vld [vmem:[%s4981_s4 + $0x50] sm:$0xff] }
 0x7ea   : > { %2307 = vmatpush.msra.mxu1 %v2970_v4 }
 0x7eb   : > { %3179 = vtanh.f32 %v4641_v11 }
 0x7ec   : > { %3181 = vtanh.f32 %v4646_v51 }
 0x7ed   : > { %3183 = vtanh.f32 %v4661_v62 }
 0x7ee   : > { %v2148_v29 = vpop.permute.xlu0 %2147  ;;  %v4648_v0 = vpop.permute.xlu1 %1998 }
 0x7ef   : > { %v2194_v30 = vmul.f32 %v2148_v29, %v4376_v22  ;;  %2967 = vmatmul.msk.f32.gmra.mxu0 %vm600_vm2, %v4648_v0 }
 0x7f1   : > { %v4653_v38 = vpop.eup %3179  ;;  %2232 = vrot.lane.b32.xlu1 %v2194_v30, %s3253_s27 }
 0x7f2   : > { %2165 = vrot.lane.b32.xlu2 %v4653_v38, %s3253_s27  ;;  %v4664_v20 = vpop.eup %3181 }
 0x7f3   : > { %v4683_v8 = vpop.eup %3183 }
 0x7f6   : > { %v2150_v3 = vpop.permute.xlu1 %2149 }
 0x7f7   : > { %v2195_v22 = vmul.f32 %v2150_v3, %v4382_v50  ;;  %v2969_v50 = vld [vmem:[%s4981_s4 + $0x48] sm:$0xff] }
 0x7f8   : > { %2308 = vmatpush.msra.mxu1 %v2969_v50 }
 0x7f9   : > { %2161 = vrot.lane.b32.xlu1 %v4664_v20, %s3253_s27  ;;  %2234 = vrot.lane.b32.xlu0 %v2195_v22, %s3253_s27 }
 0x7fa   : > { %2309 = vmatpush.msra.mxu1 %v2968_v14 }
 0x7fd   : > { %v2154_v29 = vpop.permute.xlu0 %2153 }
 0x7fe   : > { %v2197_v30 = vmul.f32 %v2154_v29, %v4403_v52  ;;  %v566_v52 = vadd.f32 %v4269_v36, %v4527_v23  ;;  %v572_v36 = vadd.f32 %v4285_v55, %v4527_v23 }
 0x801   : > { %2238 = vrot.lane.b32.xlu1 %v2197_v30, %s3253_s27  ;;  %2163 = vrot.lane.b32.xlu0 %v4683_v8, %s3253_s27  ;;  %v569_v30 = vadd.f32 %v4278_v49, %v4527_v23 }
 0x805   : > { %v2156_v3 = vpop.permute.xlu1 %2155 }
 0x806   : > { %v2198_v22 = vmul.f32 %v2156_v3, %v4413_v43 }
 0x808   : > { %v2082_v13 = vpop.f32.mrf.mxu0 }
 0x809   : > { %v4691_v4 = vadd.f32 %v2082_v13, %v566_v52  ;;  %2240 = vrot.lane.b32.xlu0 %v2198_v22, %s3253_s27 }
 0x80b   : > { %5048 = vst [vmem:[#allocation3_spill] sm:$0xff] %v4691_v4  ;;  %3185 = vtanh.f32 %v4691_v4 }
 0x80d   : > { %v2158_v29 = vpop.permute.xlu0 %2157 }
 0x80e   : > { %v2199_v50 = vmul.f32 %v2158_v29, %v4427_v56 }
 0x810   : > { %2242 = vrot.lane.b32.xlu2 %v2199_v50, %s3253_s27  ;;  %v2085_v14 = vpop.f32.mrf.mxu0  ;;  %v575_v50 = vadd.f32 %v4289_v45, %v4527_v23 }
 0x811   : > { %v4699_v43 = vpop.eup %3185  ;;  %v4701_v3 = vadd.f32 %v2085_v14, %v569_v30 }
 0x812   : > { %2167 = vrot.lane.b32.xlu1 %v4699_v43, %s3253_s27 }
 0x813   : > { %5049 = vst [vmem:[#allocation2_spill] sm:$0xff] %v4701_v3  ;;  %3187 = vtanh.f32 %v4701_v3 }
 0x818   : > { %v2088_v22 = vpop.f32.mrf.mxu0 }
 0x819   : > { %v4708_v56 = vpop.eup %3187  ;;  %v4710_v52 = vadd.f32 %v2088_v22, %v572_v36 }
 0x81a   : > { %2169 = vrot.lane.b32.xlu0 %v4708_v56, %s3253_s27 }
 0x81b   : > { %3189 = vtanh.f32 %v4710_v52 }
 0x821   : > { %v4715_v49 = vpop.eup %3189 }
 0x822   : > { %v2231_v13 = vpop.permute.xlu2 %2230  ;;  %2171 = vrot.lane.b32.xlu2 %v4715_v49, %s3253_s27 }
 0x823   : > { %2972 = vmatmul.msk.f32.vlgmr.msra.gmra.mxu1 %vm600_vm2, %v2231_v13  ;;  %v578_v13 = vadd.f32 %v4291_v33, %v4527_v23 }
 0x82c   : > { %v2160_v29 = vpop.permute.xlu2 %2159 }
 0x82d   : > { %v2200_v55 = vmul.f32 %v2160_v29, %v4460_v28 }
 0x82f   : > { %2244 = vrot.lane.b32.xlu1 %v2200_v55, %s3253_s27 }
 0x83a   : > { %v2237_v14 = vpop.permute.xlu2 %2236 }
 0x84c   : > { %v2166_v28 = vpop.permute.xlu2 %2165 }
 0x84d   : > { %v2203_v23 = vmul.f32 %v2166_v28, %v4495_v10 }
 0x863   : > { %v2233_v30 = vpop.permute.xlu1 %2232 }
 0x864   : > { %v2091_v36 = vpop.f32.mrf.mxu0  ;;  %2973 = vmatmul.msk.f32.gmra.mxu1 %vm600_vm2, %v2233_v30 }
 0x865   : > { %v4725_v22 = vadd.f32 %v2091_v36, %v575_v50 }
 0x867   : > { %3191 = vtanh.f32 %v4725_v22 }
 0x86a   : > { %v2243_v50 = vpop.permute.xlu2 %2242 }
 0x86b   : > { %v2235_v34 = vpop.permute.xlu0 %2234  ;;  %v2162_v4 = vpop.permute.xlu1 %2161 }
 0x86c   : > { %v2201_v29 = vmul.f32 %v2162_v4, %v4473_v46  ;;  %v2094_v55 = vpop.f32.mrf.mxu0  ;;  %2974 = vmatmul.msk.f32.gmra.mxu1 %vm600_vm2, %v2235_v34 }
 0x86d   : > { %v4732_v45 = vpop.eup %3191  ;;  %v4734_v3 = vadd.f32 %v2094_v55, %v578_v13  ;;  %v2568_v13 = vmul.f32 %v4567_v58, %v4451_v2  ;;  %v2577_v2 = vmul.f32 %v4653_v38, %v4540_v53 }
 0x86e   : > { %2173 = vrot.lane.b32.xlu1 %v4732_v45, %s3253_s27  ;;  %2246 = vrot.lane.b32.xlu0 %v2201_v29, %s3253_s27  ;;  %v2571_v29 = vmul.f32 %v4590_v5, %v4478_v31 }
 0x86f   : > { %3193 = vtanh.f32 %v4734_v3 }
 0x873   : > { %v2164_v33 = vpop.permute.xlu0 %2163  ;;  %v2239_v4 = vpop.permute.xlu1 %2238 }
 0x874   : > { %v2202_v46 = vmul.f32 %v2164_v33, %v4486_v60  ;;  %2975 = vmatmul.msk.f32.gmra.mxu1 %vm600_vm2, %v2237_v14 }
 0x875   : > { %v4743_v34 = vpop.eup %3193 }
 0x876   : > { %2250 = vrot.lane.b32.xlu1 %v2203_v23, %s3253_s27  ;;  %2248 = vrot.lane.b32.xlu2 %v2202_v46, %s3253_s27 }
 0x877   : > { %2175 = vrot.lane.b32.xlu0 %v4743_v34, %s3253_s27 }
 0x87b   : > { %v2241_v60 = vpop.permute.xlu0 %2240 }
 0x87c   : > { %v2172_v30 = vpop.permute.xlu2 %2171  ;;  %2976 = vmatmul.msk.f32.gmra.mxu1 %vm600_vm2, %v2239_v4  ;;  %v2569_v4 = vmul.f32 %v4581_v26, %v4464_v37 }
 0x87d   : > { %v2206_v10 = vmul.f32 %v2172_v30, %v4514_v9 }
 0x87f   : > { %2256 = vrot.lane.b32.xlu1 %v2206_v10, %s3253_s27 }
 0x884   : > { %2977 = vmatmul.msk.f32.gmra.mxu1 %vm600_vm2, %v2241_v60  ;;  %v2168_v14 = vpop.permute.xlu1 %2167  ;;  %v2572_v60 = vmul.f32 %v4603_v41, %v4488_v21 }
 0x885   : > { %v2204_v36 = vmul.f32 %v2168_v14, %v4504_v40  ;;  %v2574_v40 = vmul.f32 %v4629_v57, %v4518_v42  ;;  %v2567_v14 = vmul.f32 %v4538_v25, %v4453_v1 }
 0x887   : > { %2601 = vrot.lane.b32.xlu1 %v2568_v13, %s3254_s28  ;;  %2252 = vrot.lane.b32.xlu2 %v2204_v36, %s3253_s27  ;;  %v2575_v36 = vmul.f32 %v4664_v20, %v4522_v54  ;;  %v2570_v13 = vmul.f32 %v4577_v16, %v4471_v47 }
 0x88c   : > { %v2170_v28 = vpop.permute.xlu0 %2169  ;;  %2978 = vmatmul.msk.f32.gmra.mxu1 %vm600_vm2, %v2243_v50 }
 0x88d   : > { %v2205_v9 = vmul.f32 %v2170_v28, %v4509_v27  ;;  %v2578_v28 = vmul.f32 %v4699_v43, %v4594_v12 }
 0x88f   : > { %2607 = vrot.lane.b32.xlu1 %v2571_v29, %s3254_s28  ;;  %2254 = vrot.lane.b32.xlu0 %v2205_v9, %s3253_s27  ;;  %v2573_v9 = vmul.f32 %v4614_v24, %v4499_v18  ;;  %v2576_v29 = vmul.f32 %v4683_v8, %v4533_v48 }
 0x897   : > { %2613 = vrot.lane.b32.xlu1 %v2574_v40, %s3254_s28 }
 0x89f   : > { %2619 = vrot.lane.b32.xlu1 %v2577_v2, %s3254_s28 }
 0x8a0   : > { %v2311_v27 = vpop.f32.mrf.mxu1 }
 0x8a1   : > { %v2245_v55 = vpop.permute.xlu1 %2244 }
 0x8a2   : > { %2979 = vmatmul.msk.f32.gmra.mxu1 %vm600_vm2, %v2245_v55 }
 0x8a7   : > { %2375 = vrot.lane.b32.xlu1 %v2311_v27, %s3253_s27 }
 0x8d0   : > { %v2249_v42 = vpop.permute.xlu2 %2248 }
 0x8e0   : > { %v2247_v31 = vpop.permute.xlu0 %2246  ;;  %v2174_v33 = vpop.permute.xlu1 %2173 }
 0x8e1   : > { %v2207_v23 = vmul.f32 %v2174_v33, %v4551_v39  ;;  %v2314_v50 = vpop.f32.mrf.mxu1  ;;  %2980 = vmatmul.msk.f32.gmra.mxu1 %vm600_vm2, %v2247_v31  ;;  %v2253_v37 = vpop.permute.xlu2 %2252 }
 0x8e3   : > { %2258 = vrot.lane.b32.xlu2 %v2207_v23, %s3253_s27 }
 0x8e8   : > { %v2251_v39 = vpop.permute.xlu1 %2250 }
 0x8e9   : > { %v2176_v46 = vpop.permute.xlu0 %2175  ;;  %v2317_v53 = vpop.f32.mrf.mxu1  ;;  %2981 = vmatmul.msk.f32.gmra.mxu1 %vm600_vm2, %v2249_v42 }
 0x8ea   : > { %v2208_v30 = vmul.f32 %v2176_v46, %v4563_v19 }
 0x8eb   : > { %2603 = vrot.lane.b32.xlu2 %v2569_v4, %s3254_s28 }
 0x8ec   : > { %2260 = vrot.lane.b32.xlu0 %v2208_v30, %s3253_s27 }
 0x8f1   : > { %v2320_v10 = vpop.f32.mrf.mxu1  ;;  %2982 = vmatmul.msk.f32.gmra.mxu1 %vm600_vm2, %v2251_v39  ;;  %v2257_v54 = vpop.permute.xlu1 %2256 }
 0x8f2   : > { %2381 = vrot.lane.b32.xlu1 %v2320_v10, %s3253_s27 }
 0x8f3   : > { %2609 = vrot.lane.b32.xlu2 %v2572_v60, %s3254_s28 }
 0x8f4   : > { %2599 = vrot.lane.b32.xlu0 %v2567_v14, %s3254_s28 }
 0x8f9   : > { %v2323_v19 = vpop.f32.mrf.mxu1  ;;  %2983 = vmatmul.msk.f32.gmra.mxu1 %vm600_vm2, %v2253_v37  ;;  %v4814_v40 = vpop.permute.xlu1 %2601 }
 0x8fb   : > { %2615 = vrot.lane.b32.xlu2 %v2575_v36, %s3254_s28 }
 0x8fc   : > { %2605 = vrot.lane.b32.xlu0 %v2570_v13, %s3254_s28 }
 0x901   : > { %v2255_v21 = vpop.permute.xlu0 %2254  ;;  %v2326_v1 = vpop.f32.mrf.mxu1 }
 0x902   : > { %2984 = vmatmul.msk.f32.gmra.mxu1 %vm600_vm2, %v2255_v21  ;;  %v4818_v55 = vpop.permute.xlu1 %2607 }
 0x903   : > { %2621 = vrot.lane.b32.xlu2 %v2578_v28, %s3254_s28 }
 0x904   : > { %2611 = vrot.lane.b32.xlu0 %v2573_v9, %s3254_s28 }
 0x909   : > { %v2329_v47 = vpop.f32.mrf.mxu1 }
 0x90a   : > { %2387 = vrot.lane.b32.xlu1 %v2329_v47, %s3253_s27  ;;  %2985 = vmatmul.msk.f32.gmra.mxu1 %vm600_vm2, %v2257_v54  ;;  %v4821_v31 = vpop.permute.xlu1 %2613  ;;  %v2579_v54 = vmul.f32 %v4708_v56, %v4607_v61 }
 0x90b   : > { %2377 = vrot.lane.b32.xlu2 %v2314_v50, %s3253_s27 }
 0x90c   : > { %2617 = vrot.lane.b32.xlu0 %v2576_v29, %s3254_s28 }
 0x912   : > { %v4825_v50 = vpop.permute.xlu1 %2619 }
 0x913   : > { %2383 = vrot.lane.b32.xlu2 %v2323_v19, %s3253_s27 }
 0x914   : > { %2379 = vrot.lane.b32.xlu0 %v2317_v53, %s3253_s27 }
 0x91a   : > { %v2376_v46 = vpop.permute.xlu1 %2375 }
 0x91b   : > { %v2423_v53 = vadd.f32 %v2376_v46, %v4531_v6 }
 0x91c   : > { %2385 = vrot.lane.b32.xlu0 %v2326_v1, %s3253_s27 }
 0x91d   : > { %3195 = vtanh.f32 %v2423_v53 }
 0x91f   : > { %v2332_v18 = vpop.f32.mrf.mxu1 }
 0x920   : > { %2389 = vrot.lane.b32.xlu2 %v2332_v18, %s3253_s27 }
 0x923   : > { %v3196_v10 = vpop.eup %3195 }
 0x93d   : > { %v2259_v12 = vpop.permute.xlu2 %2258 }
 0x93e   : > { %2986 = vmatmul.msk.f32.gmra.mxu1 %vm600_vm2, %v2259_v12 }
 0x945   : > { %v4832_v14 = vpop.permute.xlu2 %2603 }
 0x94d   : > { %v4836_v6 = vpop.permute.xlu2 %2609 }
 0x955   : > { %v4839_v13 = vpop.permute.xlu2 %2615 }
 0x95e   : > { %v2261_v2 = vpop.permute.xlu0 %2260  ;;  %v2335_v48 = vpop.f32.mrf.mxu1 }
 0x95f   : > { %2987 = vmatmul.msk.f32.gmra.mxu1 %vm600_vm2, %v2261_v2  ;;  %2391 = vrot.lane.b32.xlu0 %v2335_v48, %s3253_s27 }
 0x964   : > { %v2382_v30 = vpop.permute.xlu1 %2381 }
 0x965   : > { %v2426_v39 = vadd.f32 %v2382_v30, %v4565_v17  ;;  %v4841_v17 = vpop.permute.xlu2 %2621 }
 0x966   : > { %v2338_v27 = vpop.f32.mrf.mxu1  ;;  %v4843_v21 = vpop.permute.xlu0 %2599 }
 0x967   : > { %2393 = vrot.lane.b32.xlu1 %v2338_v27, %s3253_s27  ;;  %3197 = vtanh.f32 %v2426_v39 }
 0x96d   : > { %v3198_v19 = vpop.eup %3197  ;;  %v2378_v28 = vpop.permute.xlu2 %2377 }
 0x96e   : > { %v2341_v33 = vpop.f32.mrf.mxu1  ;;  %v2424_v9 = vadd.f32 %v2378_v28, %v4549_v63 }
 0x96f   : > { %2395 = vrot.lane.b32.xlu2 %v2341_v33, %s3253_s27 }
 0x975   : > { %v2384_v47 = vpop.permute.xlu2 %2383 }
 0x976   : > { %v2344_v23 = vpop.f32.mrf.mxu1  ;;  %v2427_v29 = vadd.f32 %v2384_v47, %v4579_v59 }
 0x977   : > { %2397 = vrot.lane.b32.xlu0 %v2344_v23, %s3253_s27 }
 0x97c   : > { %v2388_v60 = vpop.permute.xlu1 %2387 }
 0x97d   : > { %v2429_v37 = vadd.f32 %v2388_v60, %v4605_v7  ;;  %v4846_v7 = vpop.permute.xlu0 %2605  ;;  %v2390_v2 = vpop.permute.xlu2 %2389 }
 0x97e   : > { %v2430_v48 = vadd.f32 %v2390_v2, %v4626_v44 }
 0x97f   : > { %v2347_v42 = vpop.f32.mrf.mxu1  ;;  %3199 = vtanh.f32 %v2429_v37 }
 0x980   : > { %2399 = vrot.lane.b32.xlu1 %v2347_v42, %s3253_s27  ;;  %3201 = vtanh.f32 %v2424_v9 }
 0x981   : > { %3203 = vtanh.f32 %v2427_v29 }
 0x982   : > { %3205 = vtanh.f32 %v2430_v48 }
 0x985   : > { %v3200_v36 = vpop.eup %3199  ;;  %v4853_v18 = vpop.permute.xlu0 %2611 }
 0x986   : > { %v3202_v12 = vpop.eup %3201 }
 0x987   : > { %v2350_v4 = vpop.f32.mrf.mxu1  ;;  %v3204_v27 = vpop.eup %3203 }
 0x988   : > { %2401 = vrot.lane.b32.xlu2 %v2350_v4, %s3253_s27  ;;  %v3206_v42 = vpop.eup %3205 }
 0x98d   : > { %v4857_v63 = vpop.permute.xlu0 %2617 }
 0x990   : > { %2487 = vrot.lane.b32.xlu2 %v3196_v10, %s3252_s14 }
 0x995   : > { %v2380_v53 = vpop.permute.xlu0 %2379 }
 0x996   : > { %v2425_v4 = vadd.f32 %v2380_v53, %v4561_v32 }
 0x998   : > { %2493 = vrot.lane.b32.xlu2 %v3198_v19, %s3252_s14 }
 0x9a0   : > { %2499 = vrot.lane.b32.xlu2 %v3200_v36, %s3252_s14  ;;  %v2582_v36 = vmul.f32 %v4743_v34, %v4648_v0 }
 0x9bb   : > { %v2353_v1 = vpop.f32.mrf.mxu1 }
 0x9bc   : > { %2403 = vrot.lane.b32.xlu0 %v2353_v1, %s3253_s27  ;;  %v5050_v1 = vld [vmem:[#allocation2_spill] sm:$0xff] }
 0x9c4   : > { %2623 = vrot.lane.b32.xlu0 %v2579_v54, %s3254_s28  ;;  %v5051_v54 = vld [vmem:[#allocation3_spill] sm:$0xff] }
 0x9c9   : > { %v2396_v61 = vpop.permute.xlu2 %2395 }
 0x9ca   : > { %v2433_v33 = vadd.f32 %v2396_v61, %v4641_v11  ;;  %v2580_v11 = vmul.f32 %v4715_v49, %v4616_v35  ;;  %v2455_v61 = vsub.f32 1.0, %v4538_v25 }
 0x9cc   : > { %2489 = vrot.lane.b32.xlu0 %v3202_v12, %s3252_s14 }
 0x9d4   : > { %2495 = vrot.lane.b32.xlu0 %v3204_v27, %s3252_s14 }
 0x9d9   : > { %v2394_v23 = vpop.permute.xlu1 %2393 }
 0x9da   : > { %v2432_v59 = vadd.f32 %v2394_v23, %v4661_v62  ;;  %v2386_v62 = vpop.permute.xlu0 %2385 }
 0x9db   : > { %v2428_v60 = vadd.f32 %v2386_v62, %v4592_v15 }
 0x9dc   : > { %3207 = vtanh.f32 %v2432_v59  ;;  %v2356_v46 = vpop.f32.mrf.mxu1  ;;  %2501 = vrot.lane.b32.xlu0 %v3206_v42, %s3252_s14  ;;  %v2458_v42 = vsub.f32 1.0, %v4577_v16 }
 0x9dd   : > { %3209 = vtanh.f32 %v2433_v33  ;;  %2405 = vrot.lane.b32.xlu1 %v2356_v46, %s3253_s27 }
 0x9e2   : > { %v3208_v44 = vpop.eup %3207  ;;  %v2402_v30 = vpop.permute.xlu2 %2401 }
 0x9e3   : > { %v3210_v39 = vpop.eup %3209  ;;  %v2436_v10 = vadd.f32 %v2402_v30, %v4710_v52  ;;  %2505 = vrot.lane.b32.xlu2 %v3208_v44, %s3252_s14  ;;  %v2392_v52 = vpop.permute.xlu0 %2391 }
 0x9e4   : > { %2507 = vrot.lane.b32.xlu0 %v3210_v39, %s3252_s14  ;;  %v2431_v19 = vadd.f32 %v2392_v52, %v4646_v51 }
 0x9e5   : > { %3211 = vtanh.f32 %v2436_v10  ;;  %2625 = vrot.lane.b32.xlu1 %v2580_v11, %s3254_s28 }
 0x9e6   : > { %3213 = vtanh.f32 %v2425_v4 }
 0x9e7   : > { %3215 = vtanh.f32 %v2428_v60 }
 0x9ea   : > { %v2488_v48 = vpop.permute.xlu2 %2487 }
 0x9eb   : > { %v3212_v37 = vpop.eup %3211  ;;  %v2398_v15 = vpop.permute.xlu0 %2397  ;;  %v2535_v33 = vmul.f32 %v2488_v48, %v2455_v61  ;;  %v2466_v48 = vsub.f32 1.0, %v4699_v43 }
 0x9ec   : > { %v3214_v32 = vpop.eup %3213  ;;  %2513 = vrot.lane.b32.xlu0 %v3212_v37, %s3252_s14  ;;  %v2434_v47 = vadd.f32 %v2398_v15, %v5051_v54 }
 0x9ed   : > { %2491 = vrot.lane.b32.xlu1 %v3214_v32, %s3252_s14  ;;  %v3216_v9 = vpop.eup %3215  ;;  %v2647_v59 = vadd.f32 %v4843_v21, %v2535_v33  ;;  %v2464_v21 = vsub.f32 1.0, %v4683_v8  ;;  %v2467_v32 = vsub.f32 1.0, %v4708_v56 }
 0x9f2   : > { %v2400_v35 = vpop.permute.xlu1 %2399  ;;  %v2494_v23 = vpop.permute.xlu2 %2493 }
 0x9f3   : > { %v2435_v28 = vadd.f32 %v2400_v35, %v5050_v1  ;;  %v2538_v46 = vmul.f32 %v2494_v23, %v2458_v42 }
 0x9f4   : > { %2629 = vrot.lane.b32.xlu0 %v2582_v36, %s3254_s28 }
 0x9f5   : > { %3217 = vtanh.f32 %v2435_v28  ;;  %2497 = vrot.lane.b32.xlu1 %v3216_v9, %s3252_s14  ;;  %v2650_v53 = vadd.f32 %v4846_v7, %v2538_v46  ;;  %v2460_v9 = vsub.f32 1.0, %v4603_v41 }
 0x9f6   : > { %3219 = vtanh.f32 %v2431_v19  ;;  %v5052_v19 = vld [vmem:[#allocation4_spill] sm:$0xff] }
 0x9f7   : > { %3221 = vtanh.f32 %v2434_v47  ;;  %v2581_v35 = vmul.f32 %v4732_v45, %v5052_v19  ;;  %v2459_v47 = vsub.f32 1.0, %v4590_v5 }
 0x9fa   : > { %v2500_v44 = vpop.permute.xlu2 %2499 }
 0x9fb   : > { %v3218_v29 = vpop.eup %3217 }
 0x9fc   : > { %v3220_v12 = vpop.eup %3219  ;;  %2511 = vrot.lane.b32.xlu2 %v3218_v29, %s3252_s14 }
 0x9fd   : > { %2503 = vrot.lane.b32.xlu1 %v3220_v12, %s3252_s14  ;;  %v3222_v51 = vpop.eup %3221 }
 0xa05   : > { %2509 = vrot.lane.b32.xlu1 %v3222_v51, %s3252_s14 }
 0xa2e   : > { %v2404_v0 = vpop.permute.xlu0 %2403 }
 0xa2f   : > { %v2437_v2 = vadd.f32 %v2404_v0, %v4725_v22  ;;  %v2461_v22 = vsub.f32 1.0, %v4614_v24 }
 0xa31   : > { %3223 = vtanh.f32 %v2437_v2  ;;  %v2541_v4 = vmul.f32 %v2500_v44, %v2461_v22  ;;  %v2469_v44 = vsub.f32 1.0, %v4732_v45 }
 0xa33   : > { %v2653_v25 = vadd.f32 %v4853_v18, %v2541_v4 }
 0xa36   : > { %v2624_v30 = vpop.permute.xlu0 %2623 }
 0xa37   : > { %v3224_v27 = vpop.eup %3223 }
 0xa38   : > { %2515 = vrot.lane.b32.xlu1 %v3224_v27, %s3252_s14 }
 0xa3d   : > { %v2506_v39 = vpop.permute.xlu2 %2505 }
 0xa3e   : > { %v2544_v11 = vmul.f32 %v2506_v39, %v2464_v21  ;;  %v2490_v37 = vpop.permute.xlu0 %2489 }
 0xa40   : > { %2679 = vrot.lane.b32.xlu1 %v2647_v59, %s3253_s27  ;;  %v2656_v7 = vadd.f32 %v4857_v63, %v2544_v11  ;;  %v2456_v63 = vsub.f32 1.0, %v4567_v58  ;;  %v2468_v59 = vsub.f32 1.0, %v4715_v49 }
 0xa42   : > { %v2536_v28 = vmul.f32 %v2490_v37, %v2456_v63 }
 0xa46   : > { %v2496_v56 = vpop.permute.xlu0 %2495 }
 0xa47   : > { %v2539_v29 = vmul.f32 %v2496_v56, %v2459_v47 }
 0xa48   : > { %2685 = vrot.lane.b32.xlu1 %v2650_v53, %s3253_s27 }
 0xa49   : > { %v2651_v51 = vadd.f32 %v4818_v55, %v2539_v29  ;;  %v2465_v55 = vsub.f32 1.0, %v4653_v38  ;;  %v2470_v38 = vsub.f32 1.0, %v4743_v34 }
 0xa4e   : > { %v2502_v12 = vpop.permute.xlu0 %2501 }
 0xa4f   : > { %v2406_v10 = vpop.permute.xlu1 %2405 }
 0xa50   : > { %v2438_v16 = vadd.f32 %v2406_v10, %v4734_v3  ;;  %2691 = vrot.lane.b32.xlu1 %v2653_v25, %s3253_s27  ;;  %v2457_v3 = vsub.f32 1.0, %v4581_v26  ;;  %v2648_v26 = vadd.f32 %v4814_v40, %v2536_v28  ;;  %v2462_v40 = vsub.f32 1.0, %v4629_v57 }
 0xa52   : > { %3225 = vtanh.f32 %v2438_v16  ;;  %v2542_v2 = vmul.f32 %v2502_v12, %v2462_v40 }
 0xa54   : > { %v2654_v27 = vadd.f32 %v4821_v31, %v2542_v2 }
 0xa56   : > { %v2512_v62 = vpop.permute.xlu2 %2511 }
 0xa57   : > { %v2626_v24 = vpop.permute.xlu1 %2625  ;;  %v2547_v18 = vmul.f32 %v2512_v62, %v2467_v32 }
 0xa58   : > { %v3226_v60 = vpop.eup %3225  ;;  %2697 = vrot.lane.b32.xlu1 %v2656_v7, %s3253_s27 }
 0xa59   : > { %2517 = vrot.lane.b32.xlu2 %v3226_v60, %s3252_s14  ;;  %v2659_v8 = vadd.f32 %v2624_v30, %v2547_v18 }
 0xa5f   : > { %v2492_v52 = vpop.permute.xlu1 %2491 }
 0xa60   : > { %v2537_v36 = vmul.f32 %v2492_v52, %v2457_v3  ;;  %2703 = vrot.lane.b32.xlu1 %v2659_v8, %s3253_s27 }
 0xa61   : > { %2627 = vrot.lane.b32.xlu2 %v2581_v35, %s3254_s28 }
 0xa62   : > { %v2649_v1 = vadd.f32 %v4832_v14, %v2537_v36  ;;  %v2463_v14 = vsub.f32 1.0, %v4664_v20 }
 0xa64   : > { %2683 = vrot.lane.b32.xlu0 %v2649_v1, %s3253_s27 }
 0xa67   : > { %v2498_v15 = vpop.permute.xlu1 %2497 }
 0xa68   : > { %v2540_v54 = vmul.f32 %v2498_v15, %v2460_v9 }
 0xa69   : > { %2681 = vrot.lane.b32.xlu2 %v2648_v26, %s3253_s27 }
 0xa6a   : > { %v2652_v58 = vadd.f32 %v4836_v6, %v2540_v54  ;;  %v2508_v6 = vpop.permute.xlu0 %2507 }
 0xa6b   : > { %v2545_v33 = vmul.f32 %v2508_v6, %v2465_v55 }
 0xa6c   : > { %2689 = vrot.lane.b32.xlu0 %v2652_v58, %s3253_s27 }
 0xa6f   : > { %v2504_v0 = vpop.permute.xlu1 %2503 }
 0xa70   : > { %v2543_v41 = vmul.f32 %v2504_v0, %v2463_v14 }
 0xa71   : > { %2687 = vrot.lane.b32.xlu2 %v2651_v51, %s3253_s27 }
 0xa72   : > { %v2655_v5 = vadd.f32 %v4839_v13, %v2543_v41  ;;  %v2657_v13 = vadd.f32 %v4825_v50, %v2545_v33  ;;  %v2514_v23 = vpop.permute.xlu0 %2513 }
 0xa73   : > { %v2548_v43 = vmul.f32 %v2514_v23, %v2468_v59 }
 0xa74   : > { %2695 = vrot.lane.b32.xlu0 %v2655_v5, %s3253_s27 }
 0xa75   : > { %v2660_v31 = vadd.f32 %v2626_v24, %v2548_v43 }
 0xa77   : > { %v2510_v20 = vpop.permute.xlu1 %2509 }
 0xa78   : > { %v2546_v61 = vmul.f32 %v2510_v20, %v2466_v48 }
 0xa79   : > { %2693 = vrot.lane.b32.xlu2 %v2654_v27, %s3253_s27 }
 0xa7a   : > { %v2658_v57 = vadd.f32 %v4841_v17, %v2546_v61  ;;  %v2630_v46 = vpop.permute.xlu0 %2629 }
 0xa7c   : > { %2701 = vrot.lane.b32.xlu0 %v2658_v57, %s3253_s27 }
 0xa81   : > { %2699 = vrot.lane.b32.xlu2 %v2657_v13, %s3253_s27 }
 0xa89   : > { %2705 = vrot.lane.b32.xlu2 %v2660_v31, %s3253_s27 }
 0xaaa   : > { %v2516_v42 = vpop.permute.xlu1 %2515 }
 0xaab   : > { %v2549_v22 = vmul.f32 %v2516_v42, %v2469_v44 }
 0xab2   : > { %v2680_v50 = vpop.permute.xlu1 %2679 }
 0xab3   : > { %v2518_v49 = vpop.permute.xlu2 %2517  ;;  %2727 = vst.msk [vmem:[%s4936_s30] sm:$0xff] %vm600_vm2, %v2680_v50 }
 0xab4   : > { %v2550_v17 = vmul.f32 %v2518_v49, %v2470_v38 }
 0xab6   : > { %v2662_v53 = vadd.f32 %v2630_v46, %v2550_v17 }
 0xab8   : > { %2709 = vrot.lane.b32.xlu1 %v2662_v53, %s3253_s27 }
 0xaba   : > { %v2686_v4 = vpop.permute.xlu1 %2685 }
 0xabb   : > { %v2628_v34 = vpop.permute.xlu2 %2627  ;;  %2730 = vst.msk [vmem:[%s4936_s30 + $0x18] sm:$0xff] %vm600_vm2, %v2686_v4 }
 0xabc   : > { %v2661_v25 = vadd.f32 %v2628_v34, %v2549_v22 }
 0xabe   : > { %2707 = vrot.lane.b32.xlu0 %v2661_v25, %s3253_s27 }
 0xac2   : > { %v2692_v30 = vpop.permute.xlu1 %2691 }
 0xac3   : > { %v2682_v39 = vpop.permute.xlu2 %2681  ;;  %2733 = vst.msk [vmem:[%s4936_s30 + $0x30] sm:$0xff] %vm600_vm2, %v2692_v30 }
 0xac4   : > { %2728 = vst.msk [vmem:[%s4936_s30 + $0x8] sm:$0xff] %vm600_vm2, %v2682_v39 }
 0xaca   : > { %v2698_v45 = vpop.permute.xlu1 %2697 }
 0xacb   : > { %v2688_v10 = vpop.permute.xlu2 %2687  ;;  %2736 = vst.msk [vmem:[%s4936_s30 + $0x48] sm:$0xff] %vm600_vm2, %v2698_v45 }
 0xacc   : > { %2731 = vst.msk [vmem:[%s4936_s30 + $0x20] sm:$0xff] %vm600_vm2, %v2688_v10 }
 0xad2   : > { %v2704_v21 = vpop.permute.xlu1 %2703 }
 0xad3   : > { %v2694_v16 = vpop.permute.xlu2 %2693  ;;  %2739 = vst.msk [vmem:[%s4936_s30 + $0x60] sm:$0xff] %vm600_vm2, %v2704_v21 }
 0xad4   : > { %2734 = vst.msk [vmem:[%s4936_s30 + $0x38] sm:$0xff] %vm600_vm2, %v2694_v16 }
 0xad6   : > { %v2684_v11 = vpop.permute.xlu0 %2683 }
 0xad7   : > { %2729 = vst.msk [vmem:[%s4936_s30 + $0x10] sm:$0xff] %vm600_vm2, %v2684_v11 }
 0xadb   : > { %v2700_v7 = vpop.permute.xlu2 %2699 }
 0xadc   : > { %2737 = vst.msk [vmem:[%s4936_s30 + $0x50] sm:$0xff] %vm600_vm2, %v2700_v7 }
 0xade   : > { %v2690_v62 = vpop.permute.xlu0 %2689 }
 0xadf   : > { %2732 = vst.msk [vmem:[%s4936_s30 + $0x28] sm:$0xff] %vm600_vm2, %v2690_v62 }
 0xae3   : > { %v2706_v24 = vpop.permute.xlu2 %2705 }
 0xae4   : > { %2740 = vst.msk [vmem:[%s4936_s30 + $0x68] sm:$0xff] %vm600_vm2, %v2706_v24 }
 0xae6   : > { %v2696_v60 = vpop.permute.xlu0 %2695 }
 0xae7   : > { %2735 = vst.msk [vmem:[%s4936_s30 + $0x40] sm:$0xff] %vm600_vm2, %v2696_v60 }
 0xaee   : > { %v2702_v37 = vpop.permute.xlu0 %2701 }
 0xaef   : > { %2738 = vst.msk [vmem:[%s4936_s30 + $0x58] sm:$0xff] %vm600_vm2, %v2702_v37 }
 0xb2a   : > { %v2710_v32 = vpop.permute.xlu1 %2709 }
 0xb2b   : > { %2742 = vst.msk [vmem:[%s4936_s30 + $0x78] sm:$0xff] %vm600_vm2, %v2710_v32 }
 0xb30   : > { %v2708_v18 = vpop.permute.xlu0 %2707 }
 0xb31   : > { %2741 = vst.msk [vmem:[%s4936_s30 + $0x70] sm:$0xff] %vm600_vm2, %v2708_v18 }
 0xb32 PF: > { %s15_s18 = sadd.s32 1, %s3250_s18  }
 0xb33   : > { %p12_p4 = scmp.ge.s32.totalorder %s15_s18, 4  }
 0xb35   :  { %14 = sbr.rel (!%p12_p4) target bundleno = 1 (0x1), region = 74 }

</bundles_post_ra>
